<compile_context>
chip_gen: v5e
topology: v5e:2x2
jax: 0.10.0
libtpu: 0.0.40
codegen_flags: <defaults>
</compile_context>

<pallas_src>
import functools

import jax
import jax.numpy as jnp
from jax.experimental import pallas as pl
from jax.experimental.pallas import tpu as pltpu

NUM_ANCHORS = 3
NUM_PROPOSALS = 4

# VGG16 `features` with the final MaxPool removed ([:-1]) -> stride 16 overall.
VGG_CFG = [64, 64, "M", 128, 128, "M", 256, 256, 256, "M",
           512, 512, 512, "M", 512, 512, 512]


# ----------------------------------------------------------------------------
# Pallas matmul kernel (bf16 MXU, f32 accumulation, fused bias + activation)
# ----------------------------------------------------------------------------
def _matmul_kernel(a_ref, b_ref, bias_ref, o_ref, acc_ref, *, activation):
    @pl.when(pl.program_id(2) == 0)
    def _():
        acc_ref[...] = jnp.zeros_like(acc_ref)

    acc_ref[...] += jnp.dot(a_ref[...], b_ref[...],
                            preferred_element_type=jnp.float32)

    @pl.when(pl.program_id(2) == pl.num_programs(2) - 1)
    def _():
        r = acc_ref[...] + bias_ref[...]
        if activation == "relu":
            r = jnp.maximum(r, 0.0)
        elif activation == "softmax":
            # Valid only when the full N dimension fits in one block (asserted
            # in the wrapper): softmax over the last axis of the tile == dim=1.
            r = r - jnp.max(r, axis=-1, keepdims=True)
            e = jnp.exp(r)
            r = e / jnp.sum(e, axis=-1, keepdims=True)
        o_ref[...] = r.astype(o_ref.dtype)


def _choose_tiles(M, K, N):
    # M tile: biggest of 512/256/128 that divides M, else one padded-to-8 block.
    if M % 512 == 0:
        tm = 512
    elif M % 256 == 0:
        tm = 256
    elif M % 128 == 0:
        tm = 128
    elif M <= 1024:
        tm = -(-M // 8) * 8
    else:
        tm = 128
    mp = -(-M // tm) * tm
    # N tile: biggest of 512/256/128 dividing N, else the full (lane-exempt) dim.
    tn = next((t for t in (512, 256, 128) if N % t == 0), N)
    # K tile: full K if it fits, else the largest 128-multiple divisor <= 3584
    # (so no ragged-K zero padding: K=27, 576, ..., 4608, 25088 all divide clean).
    if K <= 3584:
        tk, kp = K, K
    else:
        tk = next((t for t in range(3584, 127, -128) if K % t == 0), 2048)
        kp = -(-K // tk) * tk
    return tm, mp, tn, tk, kp


def _pad2(x, rows, cols):
    pr, pc = rows - x.shape[0], cols - x.shape[1]
    if pr == 0 and pc == 0:
        return x
    return jnp.pad(x, ((0, pr), (0, pc)))


def pallas_matmul(a, b, bias, activation="none", out_dtype=jnp.float32):
    """a: (M, K), b: (K, N), bias: (N,) -> (M, N) with fused bias/activation.

    Operands are cast to bf16 (MXU), accumulation is f32.
    """
    M, K = a.shape
    K2, N = b.shape
    assert K == K2
    tm, mp, tn, tk, kp = _choose_tiles(M, K, N)
    if activation == "softmax":
        assert tn == N, "softmax fusion requires a single N block"

    a_p = _pad2(a.astype(jnp.bfloat16), mp, kp)
    b_p = _pad2(b.astype(jnp.bfloat16), kp, N)       # no-op for pre-cast weights
    bias_p = bias.astype(jnp.float32).reshape(1, N)

    out = pl.pallas_call(
        functools.partial(_matmul_kernel, activation=activation),
        out_shape=jax.ShapeDtypeStruct((mp, N), out_dtype),
        grid_spec=pltpu.PrefetchScalarGridSpec(
            num_scalar_prefetch=0,
            grid=(mp // tm, N // tn, kp // tk),
            in_specs=[
                pl.BlockSpec((tm, tk), lambda i, j, k: (i, k)),
                pl.BlockSpec((tk, tn), lambda i, j, k: (k, j)),
                pl.BlockSpec((1, tn), lambda i, j, k: (0, j)),
            ],
            out_specs=pl.BlockSpec((tm, tn), lambda i, j, k: (i, j)),
            scratch_shapes=[pltpu.VMEM((tm, tn), jnp.float32)],
        ),
        compiler_params=pltpu.CompilerParams(
            dimension_semantics=("parallel", "parallel", "arbitrary")),
    )(a_p, b_p, bias_p)
    if mp != M:
        out = out[:M]
    return out


# ----------------------------------------------------------------------------
# RoIPool kernel: tiled masked-max reduction over HW with a running accumulator
# ----------------------------------------------------------------------------
_ROI_THW = 8  # HW rows processed per grid step


def _roi_pool_kernel(feat_ref, mask_ref, o_ref, acc_ref):
    # feat: (THW, C) post-ReLU (>=0) features; mask: (THW, NB) {0,1} bin masks.
    # torchvision RoIPool semantics: max over bin, empty bin -> 0.
    k = pl.program_id(0)

    @pl.when(k == 0)
    def _():
        acc_ref[...] = jnp.zeros_like(acc_ref)

    f = feat_ref[...].astype(jnp.float32)                     # (THW, C)
    m = mask_ref[...]                                         # (THW, NB)
    # NOTE: relies on f >= 0 (post-ReLU) so masked-by-zero + 0-init max matches
    # the reference (empty bin -> 0).
    cand = jnp.max(m[:, :, None] * f[:, None, :], axis=0)     # (NB, C)
    acc_ref[...] = jnp.maximum(acc_ref[...], cand)

    @pl.when(k == pl.num_programs(0) - 1)
    def _():
        o_ref[...] = acc_ref[...].astype(o_ref.dtype)


def _round_half_away(v):
    # torchvision uses C++ std::round (half away from zero); coords are >= 0.
    return jnp.floor(v + 0.5)


def _roi_bin_masks(boxes, h, w, out_size=7, spatial_scale=1.0 / 16.0):
    # Replicates torchvision RoIPool bin quantization (round / floor / ceil / clamp).
    x1 = _round_half_away(boxes[:, 0] * spatial_scale)
    y1 = _round_half_away(boxes[:, 1] * spatial_scale)
    x2 = _round_half_away(boxes[:, 2] * spatial_scale)
    y2 = _round_half_away(boxes[:, 3] * spatial_scale)
    roi_w = jnp.maximum(x2 - x1 + 1.0, 1.0)
    roi_h = jnp.maximum(y2 - y1 + 1.0, 1.0)
    bin_h = roi_h / out_size
    bin_w = roi_w / out_size
    p = jnp.arange(out_size, dtype=jnp.float32)
    hstart = jnp.clip(jnp.floor(p[None, :] * bin_h[:, None]) + y1[:, None], 0, h)
    hend = jnp.clip(jnp.ceil((p[None, :] + 1.0) * bin_h[:, None]) + y1[:, None], 0, h)
    wstart = jnp.clip(jnp.floor(p[None, :] * bin_w[:, None]) + x1[:, None], 0, w)
    wend = jnp.clip(jnp.ceil((p[None, :] + 1.0) * bin_w[:, None]) + x1[:, None], 0, w)
    hh = jnp.arange(h, dtype=jnp.float32)
    ww = jnp.arange(w, dtype=jnp.float32)
    hmask = (hh[None, None, :] >= hstart[:, :, None]) & (hh[None, None, :] < hend[:, :, None])
    wmask = (ww[None, None, :] >= wstart[:, :, None]) & (ww[None, None, :] < wend[:, :, None])
    mask = hmask[:, :, None, :, None] & wmask[:, None, :, None, :]  # (R,7,7,H,W)
    r = boxes.shape[0]
    return mask.astype(jnp.float32).reshape(r * out_size * out_size, h * w)


def roi_pool(features, boxes, out_size=7, spatial_scale=1.0 / 16.0):
    # features: (1, H, W, C) NHWC (bf16); boxes: (R, 4) (x1,y1,x2,y2) image coords.
    _, h, w, c = features.shape
    r = boxes.shape[0]
    hw = h * w
    nb = r * out_size * out_size
    feat2d = features[0].reshape(hw, c)
    mask_t = _roi_bin_masks(boxes, h, w, out_size, spatial_scale).T   # (HW, NB)

    hwp = -(-hw // _ROI_THW) * _ROI_THW
    if hwp != hw:
        feat2d = jnp.pad(feat2d, ((0, hwp - hw), (0, 0)))
        mask_t = jnp.pad(mask_t, ((0, hwp - hw), (0, 0)))

    out = pl.pallas_call(
        _roi_pool_kernel,
        out_shape=jax.ShapeDtypeStruct((nb, c), features.dtype),
        grid_spec=pltpu.PrefetchScalarGridSpec(
            num_scalar_prefetch=0,
            grid=(hwp // _ROI_THW,),
            in_specs=[pl.BlockSpec((_ROI_THW, c), lambda k: (k, 0)),
                      pl.BlockSpec((_ROI_THW, nb), lambda k: (k, 0))],
            out_specs=pl.BlockSpec((nb, c), lambda k: (0, 0)),
            scratch_shapes=[pltpu.VMEM((nb, c), jnp.float32)],
        ),
        compiler_params=pltpu.CompilerParams(
            dimension_semantics=("arbitrary",)),
    )(feat2d, mask_t)
    # Reorder to PyTorch's (R, C, 7, 7).view(R, -1) flattening (channel-major).
    out = out.reshape(r, out_size, out_size, c).transpose(0, 3, 1, 2)
    return out.reshape(r, c * out_size * out_size)


# ----------------------------------------------------------------------------
# Conv / pooling wrappers (im2col glue + shared Pallas matmul)
# ----------------------------------------------------------------------------
def _im2col_3x3(x):
    # x: (N, H, W, C) -> (N*H*W, 9*C); patch order is (di, dj, c).
    # TODO(synk): fuse im2col into the conv matmul via shifted BlockSpec reads to
    # avoid materializing the 9x-expanded activation through HBM.
    n, h, w, c = x.shape
    xp = jnp.pad(x, ((0, 0), (1, 1), (1, 1), (0, 0)))
    cols = [xp[:, di:di + h, dj:dj + w, :] for di in range(3) for dj in range(3)]
    return jnp.concatenate(cols, axis=-1).reshape(n * h * w, 9 * c)


def conv3x3(x, wm, b, activation="relu"):
    # x: (N, H, W, Cin) NHWC bf16; wm: (9*Cin, Cout) bf16 matmul layout; b: (Cout,)
    n, h, wd, cin = x.shape
    cout = wm.shape[1]
    cols = _im2col_3x3(x)
    y = pallas_matmul(cols, wm, b, activation=activation, out_dtype=x.dtype)
    return y.reshape(n, h, wd, cout)


def maxpool2x2(x):
    n, h, w, c = x.shape
    return x.reshape(n, h // 2, 2, w // 2, 2, c).max(axis=(2, 4))


# ----------------------------------------------------------------------------
# RPN stand-in
# ----------------------------------------------------------------------------
def rpn_forward(params, features, image_size):
    # TODO(synk): the original RPN class / propose() / assembly_proposed_pieces()
    # are external and unspecified; this is a deterministic stand-in that emits
    # NUM_PROPOSALS (x1, y1, x2, y2) boxes in input-image coordinates.
    n, h, w, c = features.shape
    t = conv3x3(features, params["rpn_conv_w"], params["rpn_conv_b"], "relu")
    flat = t.reshape(n * h * w, c)
    obj = pallas_matmul(flat, params["rpn_obj_w"], params["rpn_obj_b"], "none",
                        out_dtype=jnp.float32)
    scores = obj.reshape(h * w * NUM_ANCHORS)
    _, top_idx = jax.lax.top_k(scores, NUM_PROPOSALS)
    cell = top_idx // NUM_ANCHORS
    anchor = top_idx % NUM_ANCHORS
    cy = (cell // w).astype(jnp.float32) * 16.0 + 8.0
    cx = (cell % w).astype(jnp.float32) * 16.0 + 8.0
    half = jnp.array([12.0, 20.0, 28.0], jnp.float32)[anchor]
    img_h, img_w = image_size
    x1 = jnp.clip(cx - half, 0.0, img_w - 1.0)
    y1 = jnp.clip(cy - half, 0.0, img_h - 1.0)
    x2 = jnp.clip(cx + half, 0.0, img_w - 1.0)
    y2 = jnp.clip(cy + half, 0.0, img_h - 1.0)
    return jnp.stack([x1, y1, x2, y2], axis=-1)


# ----------------------------------------------------------------------------
# Parameters (deterministic synthetic init, torchvision-vgg16 shapes,
# pre-transposed to matmul layout and pre-cast to bf16 once)
# ----------------------------------------------------------------------------
def _conv_w_to_matmul(w):
    # torch (Cout, Cin, 3, 3) -> (9*Cin, Cout) with K order (di, dj, cin).
    cout = w.shape[0]
    return jnp.transpose(w, (2, 3, 1, 0)).reshape(-1, cout).astype(jnp.bfloat16)


def init_params(key):
    params = {"convs": []}
    cin = 3
    for v in VGG_CFG:
        if v == "M":
            continue
        key, k1 = jax.random.split(key)
        std = (2.0 / (cin * 9)) ** 0.5
        w = jax.random.normal(k1, (v, cin, 3, 3), jnp.float32) * std
        params["convs"].append((_conv_w_to_matmul(w), jnp.zeros((v,), jnp.float32)))
        cin = v

    key, k1, k2, k3, k4, k5, k6 = jax.random.split(key, 7)
    params["rpn_conv_w"] = _conv_w_to_matmul(
        jax.random.normal(k1, (512, 512, 3, 3), jnp.float32) * (2.0 / (512 * 9)) ** 0.5)
    params["rpn_conv_b"] = jnp.zeros((512,), jnp.float32)
    params["rpn_obj_w"] = (jax.random.normal(k2, (512, NUM_ANCHORS), jnp.float32)
                           * 0.01).astype(jnp.bfloat16)
    params["rpn_obj_b"] = jnp.zeros((NUM_ANCHORS,), jnp.float32)
    # FC weights stored directly in (in_features, out_features) bf16 matmul layout.
    params["fc1_w"] = (jax.random.normal(k3, (512 * 7 * 7, 4096), jnp.bfloat16)
                       * (1.0 / (512 * 7 * 7)) ** 0.5)
    params["fc1_b"] = jnp.zeros((4096,), jnp.float32)
    params["fc2_w"] = (jax.random.normal(k4, (4096, 4096), jnp.bfloat16)
                       * (1.0 / 4096) ** 0.5)
    params["fc2_b"] = jnp.zeros((4096,), jnp.float32)
    params["cls_w"] = (jax.random.normal(k5, (4096, 21), jnp.float32)
                       * 0.01).astype(jnp.bfloat16)          # nn.init.normal_(std=0.01)
    params["cls_b"] = jnp.zeros((21,), jnp.float32)
    params["reg_w"] = (jax.random.normal(k6, (4096, 84), jnp.float32)
                       * 0.01).astype(jnp.bfloat16)          # nn.init.normal_(std=0.01)
    params["reg_b"] = jnp.zeros((84,), jnp.float32)
    return params


# ----------------------------------------------------------------------------
# Full forward (mirrors myVGG.forward)
# ----------------------------------------------------------------------------
def my_vgg_forward(params, x_nchw):
    # x_nchw: (1, 3, H, W) float32 (PyTorch NCHW convention).
    x = jnp.transpose(x_nchw, (0, 2, 3, 1)).astype(jnp.bfloat16)  # -> NHWC bf16
    ci = 0
    for v in VGG_CFG:
        if v == "M":
            x = maxpool2x2(x)
        else:
            wm, b = params["convs"][ci]
            x = conv3x3(x, wm, b, "relu")
            ci += 1
    features = x                                   # (1, H/16, W/16, 512) bf16

    img_h, img_w = x_nchw.shape[2], x_nchw.shape[3]
    proposed_boxes = rpn_forward(params, features, (img_h, img_w))   # (R, 4)

    y = roi_pool(features, proposed_boxes)         # (R, 512*7*7) torch flatten order
    # FClayers: Linear+ReLU+(Dropout=id)+Linear+ReLU+(Dropout=id)
    y = pallas_matmul(y, params["fc1_w"], params["fc1_b"], "relu",
                      out_dtype=jnp.bfloat16)
    y = pallas_matmul(y, params["fc2_w"], params["fc2_b"], "relu",
                      out_dtype=jnp.bfloat16)

    # cls head with softmax(dim=1) fused into the matmul epilogue.
    cls = pallas_matmul(y, params["cls_w"], params["cls_b"], "softmax",
                        out_dtype=jnp.float32)
    regs = pallas_matmul(y, params["reg_w"], params["reg_b"], "none",
                         out_dtype=jnp.float32)
    regs = regs.reshape(-1, 21, 4)
    return cls, regs


if __name__ == "__main__":
    key = jax.random.PRNGKey(0)
    kp, kx = jax.random.split(key)
    params = init_params(kp)
    x = jax.random.normal(kx, (1, 3, 32, 32), jnp.float32)   # small NCHW input

    cls, regs = my_vgg_forward(params, x)
    cls, regs = jax.block_until_ready((cls, regs))

    assert cls.shape == (NUM_PROPOSALS, 21)
    assert regs.shape == (NUM_PROPOSALS, 21, 4)
    assert bool(jnp.all(jnp.isfinite(cls))) and bool(jnp.all(jnp.isfinite(regs)))
    assert bool(jnp.all(jnp.abs(jnp.sum(cls, axis=1) - 1.0) < 1e-3))
    print("KERNEL_OK")
</pallas_src>

<mosaic_0001>
module attributes {stable_mosaic.version = 11 : i64} {
  func.func @_matmul_kernel(%arg0: i32, %arg1: i32, %arg2: i32, %arg3: memref<512x27xbf16, #tpu.memory_space<vmem>>, %arg4: memref<27x64xbf16, #tpu.memory_space<vmem>>, %arg5: memref<1x64xf32, #tpu.memory_space<vmem>>, %arg6: memref<512x64xbf16, #tpu.memory_space<vmem>>, %arg7: memref<512x64xf32, #tpu.memory_space<vmem>>) attributes {dimension_semantics = [#tpu.dimension_semantics<parallel>, #tpu.dimension_semantics<parallel>, #tpu.dimension_semantics<arbitrary>], iteration_bounds = array<i64: 2, 1, 1>, scalar_prefetch = 0 : i64, scratch_operands = 1 : i64, tpu.core_type = #tpu.core_type<tc>, window_params = [{transform_indices = @transform_0, window_bounds = array<i64: 512, 27>}, {transform_indices = @transform_1, window_bounds = array<i64: 27, 64>}, {transform_indices = @transform_2, window_bounds = array<i64: 1, 64>}, {transform_indices = @transform_3, window_bounds = array<i64: 512, 64>}]} {
    %c0_i32 = arith.constant 0 : i32
    %0 = arith.cmpi eq, %arg2, %c0_i32 : i32
    %1 = arith.extui %0 : i1 to i32
    %c0_i32_0 = arith.constant 0 : i32
    %2 = arith.cmpi ne, %1, %c0_i32_0 : i32
    scf.if %2 {
      %cst_10 = arith.constant 0.000000e+00 : f32
      %12 = vector.broadcast %cst_10 : f32 to vector<512x64xf32>
      %c0_11 = arith.constant 0 : index
      %c0_12 = arith.constant 0 : index
      %13 = vector.load %arg7[%c0_11, %c0_12] : memref<512x64xf32, #tpu.memory_space<vmem>>, vector<512x64xf32>
      tpu.vector_store %arg7[%c0_11, %c0_12], %12 {strides = array<i32>} : memref<512x64xf32, #tpu.memory_space<vmem>>, vector<512x64xf32>,
    } else {
    }
    %c0 = arith.constant 0 : index
    %c0_1 = arith.constant 0 : index
    %3 = vector.load %arg7[%c0, %c0_1] : memref<512x64xf32, #tpu.memory_space<vmem>>, vector<512x64xf32>
    %c0_2 = arith.constant 0 : index
    %c0_3 = arith.constant 0 : index
    %4 = vector.load %arg3[%c0_2, %c0_3] : memref<512x27xbf16, #tpu.memory_space<vmem>>, vector<512x27xbf16>
    %c0_4 = arith.constant 0 : index
    %c0_5 = arith.constant 0 : index
    %5 = vector.load %arg4[%c0_4, %c0_5] : memref<27x64xbf16, #tpu.memory_space<vmem>>, vector<27x64xbf16>
    %cst = arith.constant dense<0.000000e+00> : vector<512x64xf32>
    %6 = tpu.matmul %4, %5, %cst {dimension_numbers = #tpu.dot_dimension_numbers<[1], [0], [0], [1], [0, 0, 1, 1], [], []>} : vector<512x27xbf16>, vector<27x64xbf16>, vector<512x64xf32> -> vector<512x64xf32>
    %7 = arith.addf %3, %6 : vector<512x64xf32>
    %c0_6 = arith.constant 0 : index
    %c0_7 = arith.constant 0 : index
    %8 = vector.load %arg7[%c0_6, %c0_7] : memref<512x64xf32, #tpu.memory_space<vmem>>, vector<512x64xf32>
    tpu.vector_store %arg7[%c0_6, %c0_7], %7 {strides = array<i32>} : memref<512x64xf32, #tpu.memory_space<vmem>>, vector<512x64xf32>,
    %c0_i32_8 = arith.constant 0 : i32
    %9 = arith.cmpi eq, %arg2, %c0_i32_8 : i32
    %10 = arith.extui %9 : i1 to i32
    %c0_i32_9 = arith.constant 0 : i32
    %11 = arith.cmpi ne, %10, %c0_i32_9 : i32
    scf.if %11 {
      %c0_10 = arith.constant 0 : index
      %c0_11 = arith.constant 0 : index
      %12 = vector.load %arg7[%c0_10, %c0_11] : memref<512x64xf32, #tpu.memory_space<vmem>>, vector<512x64xf32>
      %c0_12 = arith.constant 0 : index
      %c0_13 = arith.constant 0 : index
      %13 = vector.load %arg5[%c0_12, %c0_13] : memref<1x64xf32, #tpu.memory_space<vmem>>, vector<1x64xf32>
      %14 = vector.broadcast %13 : vector<1x64xf32> to vector<512x64xf32>
      %15 = arith.addf %12, %14 : vector<512x64xf32>
      %cst_14 = arith.constant 0.000000e+00 : f32
      %16 = vector.broadcast %cst_14 : f32 to vector<512x64xf32>
      %17 = arith.maximumf %15, %16 : vector<512x64xf32>
      %18 = arith.truncf %17 : vector<512x64xf32> to vector<512x64xbf16>
      %c0_15 = arith.constant 0 : index
      %c0_16 = arith.constant 0 : index
      %19 = vector.load %arg6[%c0_15, %c0_16] : memref<512x64xbf16, #tpu.memory_space<vmem>>, vector<512x64xbf16>
      tpu.vector_store %arg6[%c0_15, %c0_16], %18 {strides = array<i32>} : memref<512x64xbf16, #tpu.memory_space<vmem>>, vector<512x64xbf16>,
    } else {
    }
    return
  }
  func.func @transform_0(%arg0: i32, %arg1: i32, %arg2: i32) -> (i32, i32) {
    %c0_i32 = arith.constant 0 : i32
    return %arg0, %arg2 : i32, i32
  }
  func.func @transform_1(%arg0: i32, %arg1: i32, %arg2: i32) -> (i32, i32) {
    %c0_i32 = arith.constant 0 : i32
    return %arg2, %arg1 : i32, i32
  }
  func.func @transform_2(%arg0: i32, %arg1: i32, %arg2: i32) -> (i32, i32) {
    %c0_i32 = arith.constant 0 : i32
    %c0_i32_0 = arith.constant 0 : i32
    return %c0_i32, %arg1 : i32, i32
  }
  func.func @transform_3(%arg0: i32, %arg1: i32, %arg2: i32) -> (i32, i32) {
    %c0_i32 = arith.constant 0 : i32
    return %arg0, %arg1 : i32, i32
  }
}

</mosaic_0001>

<bundles_post_ra>
// kernel: tpu_custom_call.1
= control target key start
LH: loop header
LB: loop body
LE: loop exit
PB: predicated region body
PF: predicated region fallthrough
CT: control target
= control target key end

     0   :  { %s1768_s12 = smov 0   ;;  %s1770_s13 = smov 0   ;;  %s2302_s0 = inlined_call_operand.vmem [shape: bf16[1024,27], index: 0, kind: input, shape index: {}]   ;;  %s2303_s1 = inlined_call_operand.vmem [shape: bf16[27,64], index: 1, kind: input, shape index: {}]   ;;  %s2304_s2 = inlined_call_operand.vmem [shape: f32[1,64], index: 2, kind: input, shape index: {}]   ;;  %s2305_s3 = inlined_call_operand.vmem [shape: bf16[1024,64], index: 3, kind: output, shape index: {}]  }
   0x1   :  { %s1772_s14 = smov 0  }
   0x2 LB: > { %s32_s15 = sadd.s32 1, %s1740_s13  ;;  %p1479_p0 = scmp.ge.s32.totalorder %s1744_s14, 1  ;;  %s1744_s14 = sphi %s1772_s14, %s13_s14   ;;  %s1740_s13 = sphi %s1770_s13, %s2307_s13   ;;  %s1736_s12 = sphi %s1768_s12, %s2306_s12  }
   0x3   : > { %p34_p1 = scmp.ge.s32.totalorder %s32_s15, 2  ;;  %p188_p2 = scmp.lt.s32.totalorder %s1744_s14, 3 }
   0x5   : > { %s2309_s15 = smov (%p34_p1, %s32_s15), 0  ;;  %p189_p3 = pnand %p1479_p0, %p188_p2 }
   0x6   : > { %s1480_s20 = sshll.u32 (!%p189_p3), %s1736_s12, 6 }
   0x7   : > { %192 = sbr.rel (%p189_p3) target bundleno = 302 (0x12e), region = 32  ;;  %p230_p4 = scmp.lt.s32.totalorder (!%p189_p3), %s1480_s20, 127 }
   0xc   : > { %v1618_v0 = vld [vmem:[%s2303_s1 + $0x8] sm:$0xf]  ;;  %v1687_v1 = vld [vmem:[%s2303_s1 + $0x8] sm:$0x30]  ;;  %vm729_vm0 = vcmask 1044480   ;;  %vm730_vm1 = vcmask 1045504  }
   0xd   : > { %v1619_v2 = vor.u32 %v1687_v1, %v1618_v0  ;;  %v1746_v3 = vmov 65535   ;;  %s2311_s20 = smov (!%p230_p4, %s1480_s20), 127  ;;  %v1686_v7 = vld [vmem:[%s2303_s1] sm:$0xff]  ;;  %vm632_vm2 = vcmask 220160   ;;  %vm264_vm3 = vcmask 523264  }
   0xe   : > { %v731_v4 = vsel %vm729_vm0, 4294967295, %v1746_v3  ;;  %s1481_s23 = sshll.u32 %s2311_s20, 2  ;;  %v1747_v32 = vmov 0.0   ;;  %v1971_v45 = vld [vmem:[%s2304_s2] ss:$0 sm:$0xff]  ;;  %vm1297_vm4 = vcmask 519168  }
   0xf   : > { %v732_v5 = vsel %vm730_vm1, %v731_v4, 0  ;;  %s1803_s26 = scalar_lea.vmem %s2302_s0, %s1481_s23  ;;  %265 = vst.msk [vmem:[#allocation2] sm:$0xff] %vm264_vm3, %v1747_v32  ;;  %s1993_s4 = scalar_lea.vmem %s2305_s3, %s1481_s23 }
  0x10   : > { %v734_v6 = vand.u32 %v1619_v2, %v732_v5  ;;  %v1654_v8 = vld [vmem:[%s1803_s26] sm:$0xff]  ;;  %v1655_v12 = vld [vmem:[%s1803_s26 + $0x8] sm:$0xff]  ;;  %v1656_v16 = vld [vmem:[%s1803_s26 + $0x10] sm:$0xff]  ;;  %266 = vst.msk [vmem:[#allocation2 + $0x8] sm:$0xff] %vm264_vm3, %v1747_v32 }
  0x11   : > { %v1662_v9 = vld [vmem:[%s1803_s26 + $0x40] sm:$0xff]  ;;  %v1663_v13 = vld [vmem:[%s1803_s26 + $0x48] sm:$0xff]  ;;  %v1664_v17 = vld [vmem:[%s1803_s26 + $0x50] sm:$0xff]  ;;  %267 = vst.msk [vmem:[#allocation2 + $0x10] sm:$0xff] %vm264_vm3, %v1747_v32 }
  0x12   : > { %742 = vmatpush.bf16.msra.mxu0 %v734_v6  ;;  %1688 = vmatpush.bf16.msra.mxu1 %v734_v6  ;;  %v1670_v10 = vld [vmem:[%s1803_s26 + $0x80] sm:$0xff]  ;;  %v1671_v14 = vld [vmem:[%s1803_s26 + $0x88] sm:$0xff]  ;;  %v1672_v18 = vld [vmem:[%s1803_s26 + $0x90] sm:$0xff]  ;;  %268 = vst.msk [vmem:[#allocation2 + $0x18] sm:$0xff] %vm264_vm3, %v1747_v32 }
  0x13   : > { %1689 = vmatpush.bf16.msra.mxu2 %v734_v6  ;;  %1690 = vmatpush.bf16.msra.mxu3 %v734_v6  ;;  %v1678_v11 = vld [vmem:[%s1803_s26 + $0xc0] sm:$0xff]  ;;  %v1679_v15 = vld [vmem:[%s1803_s26 + $0xc8] sm:$0xff]  ;;  %v1680_v19 = vld [vmem:[%s1803_s26 + $0xd0] sm:$0xff]  ;;  %269 = vst.msk [vmem:[#allocation2 + $0x20] sm:$0xff] %vm264_vm3, %v1747_v32 }
  0x14   : > { %v1657_v20 = vld [vmem:[%s1803_s26 + $0x18] sm:$0xff]  ;;  %v1658_v24 = vld [vmem:[%s1803_s26 + $0x20] sm:$0xff]  ;;  %v1659_v28 = vld [vmem:[%s1803_s26 + $0x28] sm:$0xff]  ;;  %270 = vst.msk [vmem:[#allocation2 + $0x28] sm:$0xff] %vm264_vm3, %v1747_v32 }
  0x15   : > { %v1665_v21 = vld [vmem:[%s1803_s26 + $0x58] sm:$0xff]  ;;  %v1666_v25 = vld [vmem:[%s1803_s26 + $0x60] sm:$0xff]  ;;  %v1667_v29 = vld [vmem:[%s1803_s26 + $0x68] sm:$0xff]  ;;  %271 = vst.msk [vmem:[#allocation2 + $0x30] sm:$0xff] %vm264_vm3, %v1747_v32 }
  0x16   : > { %743 = vmatpush.bf16.msra.mxu0 %v1686_v7  ;;  %1691 = vmatpush.bf16.msra.mxu1 %v1686_v7  ;;  %v1673_v22 = vld [vmem:[%s1803_s26 + $0x98] sm:$0xff]  ;;  %v1674_v26 = vld [vmem:[%s1803_s26 + $0xa0] sm:$0xff]  ;;  %v1675_v30 = vld [vmem:[%s1803_s26 + $0xa8] sm:$0xff]  ;;  %272 = vst.msk [vmem:[#allocation2 + $0x38] sm:$0xff] %vm264_vm3, %v1747_v32 }
  0x17   : > { %1692 = vmatpush.bf16.msra.mxu2 %v1686_v7  ;;  %1693 = vmatpush.bf16.msra.mxu3 %v1686_v7  ;;  %v1681_v23 = vld [vmem:[%s1803_s26 + $0xd8] sm:$0xff]  ;;  %v1682_v27 = vld [vmem:[%s1803_s26 + $0xe0] sm:$0xff]  ;;  %v1683_v31 = vld [vmem:[%s1803_s26 + $0xe8] sm:$0xff]  ;;  %273 = vst.msk [vmem:[#allocation2 + $0x40] sm:$0xff] %vm264_vm3, %v1747_v32 }
  0x18   : > { %274 = vst.msk [vmem:[#allocation2 + $0x48] sm:$0xff] %vm264_vm3, %v1747_v32  ;;  %v1660_v33 = vld [vmem:[%s1803_s26 + $0x30] sm:$0xff]  ;;  %v1661_v37 = vld [vmem:[%s1803_s26 + $0x38] sm:$0xff]  ;;  %v329_v41 = vld [vmem:[#allocation2] sm:$0xff] }
  0x19   : > { %1620 = vmatmul.msk.bf16.vlgmr.msra.gmra.mxu0 %vm632_vm2, %v1654_v8  ;;  %1628 = vmatmul.msk.bf16.vlgmr.msra.gmra.mxu1 %vm632_vm2, %v1662_v9  ;;  %v1668_v34 = vld [vmem:[%s1803_s26 + $0x70] sm:$0xff]  ;;  %275 = vst.msk [vmem:[#allocation2 + $0x50] sm:$0xff] %vm264_vm3, %v1747_v32  ;;  %v1669_v38 = vld [vmem:[%s1803_s26 + $0x78] sm:$0xff]  ;;  %v330_v62 = vld [vmem:[#allocation2 + $0x8] sm:$0xff] }
  0x1a   : > { %1636 = vmatmul.msk.bf16.vlgmr.msra.gmra.mxu2 %vm632_vm2, %v1670_v10  ;;  %1644 = vmatmul.msk.bf16.vlgmr.msra.gmra.mxu3 %vm632_vm2, %v1678_v11  ;;  %v1676_v35 = vld [vmem:[%s1803_s26 + $0xb0] sm:$0xff]  ;;  %276 = vst.msk [vmem:[#allocation2 + $0x58] sm:$0xff] %vm264_vm3, %v1747_v32  ;;  %v1677_v39 = vld [vmem:[%s1803_s26 + $0xb8] sm:$0xff] }
  0x1b   : > { %v1684_v36 = vld [vmem:[%s1803_s26 + $0xf0] sm:$0xff]  ;;  %277 = vst.msk [vmem:[#allocation2 + $0x60] sm:$0xff] %vm264_vm3, %v1747_v32  ;;  %v1685_v40 = vld [vmem:[%s1803_s26 + $0xf8] sm:$0xff] }
  0x1c   : > { %278 = vst.msk [vmem:[#allocation2 + $0x68] sm:$0xff] %vm264_vm3, %v1747_v32  ;;  %v331_v6 = vld [vmem:[#allocation2 + $0x10] sm:$0xff] }
  0x1d   : > { %279 = vst.msk [vmem:[#allocation2 + $0x70] sm:$0xff] %vm264_vm3, %v1747_v32 }
  0x1e   : > { %280 = vst.msk [vmem:[#allocation2 + $0x78] sm:$0xff] %vm264_vm3, %v1747_v32 }
  0x1f   : > { %281 = vst.msk [vmem:[#allocation2 + $0x80] sm:$0xff] %vm264_vm3, %v1747_v32 }
  0x20   : > { %282 = vst.msk [vmem:[#allocation2 + $0x88] sm:$0xff] %vm264_vm3, %v1747_v32 }
  0x21   : > { %283 = vst.msk [vmem:[#allocation2 + $0x90] sm:$0xff] %vm264_vm3, %v1747_v32 }
  0x22   : > { %284 = vst.msk [vmem:[#allocation2 + $0x98] sm:$0xff] %vm264_vm3, %v1747_v32 }
  0x23   : > { %285 = vst.msk [vmem:[#allocation2 + $0xa0] sm:$0xff] %vm264_vm3, %v1747_v32 }
  0x24   : > { %286 = vst.msk [vmem:[#allocation2 + $0xa8] sm:$0xff] %vm264_vm3, %v1747_v32 }
  0x25   : > { %287 = vst.msk [vmem:[#allocation2 + $0xb0] sm:$0xff] %vm264_vm3, %v1747_v32 }
  0x26   : > { %288 = vst.msk [vmem:[#allocation2 + $0xb8] sm:$0xff] %vm264_vm3, %v1747_v32  ;;  %v345_v56 = vld [vmem:[#allocation2 + $0x80] sm:$0xff] }
  0x27   : > { %289 = vst.msk [vmem:[#allocation2 + $0xc0] sm:$0xff] %vm264_vm3, %v1747_v32  ;;  %v346_v0 = vld [vmem:[#allocation2 + $0x88] sm:$0xff] }
  0x28   : > { %290 = vst.msk [vmem:[#allocation2 + $0xc8] sm:$0xff] %vm264_vm3, %v1747_v32  ;;  %v347_v10 = vld [vmem:[#allocation2 + $0x90] sm:$0xff] }
  0x29   : > { %1621 = vmatmul.msk.bf16.gmra.mxu0 %vm632_vm2, %v1655_v12  ;;  %1629 = vmatmul.msk.bf16.gmra.mxu1 %vm632_vm2, %v1663_v13  ;;  %291 = vst.msk [vmem:[#allocation2 + $0xd0] sm:$0xff] %vm264_vm3, %v1747_v32 }
  0x2a   : > { %1637 = vmatmul.msk.bf16.gmra.mxu2 %vm632_vm2, %v1671_v14  ;;  %1645 = vmatmul.msk.bf16.gmra.mxu3 %vm632_vm2, %v1679_v15  ;;  %292 = vst.msk [vmem:[#allocation2 + $0xd8] sm:$0xff] %vm264_vm3, %v1747_v32 }
  0x2b   : > { %293 = vst.msk [vmem:[#allocation2 + $0xe0] sm:$0xff] %vm264_vm3, %v1747_v32 }
  0x2c   : > { %294 = vst.msk [vmem:[#allocation2 + $0xe8] sm:$0xff] %vm264_vm3, %v1747_v32 }
  0x2d   : > { %295 = vst.msk [vmem:[#allocation2 + $0xf0] sm:$0xff] %vm264_vm3, %v1747_v32 }
  0x2e   : > { %296 = vst.msk [vmem:[#allocation2 + $0xf8] sm:$0xff] %vm264_vm3, %v1747_v32 }
  0x2f   : > { %297 = vst.msk [vmem:[#allocation2 + $0x100] sm:$0xff] %vm264_vm3, %v1747_v32 }
  0x30   : > { %298 = vst.msk [vmem:[#allocation2 + $0x108] sm:$0xff] %vm264_vm3, %v1747_v32 }
  0x31   : > { %299 = vst.msk [vmem:[#allocation2 + $0x110] sm:$0xff] %vm264_vm3, %v1747_v32 }
  0x32   : > { %300 = vst.msk [vmem:[#allocation2 + $0x118] sm:$0xff] %vm264_vm3, %v1747_v32 }
  0x33   : > { %301 = vst.msk [vmem:[#allocation2 + $0x120] sm:$0xff] %vm264_vm3, %v1747_v32 }
  0x34   : > { %302 = vst.msk [vmem:[#allocation2 + $0x128] sm:$0xff] %vm264_vm3, %v1747_v32 }
  0x35   : > { %303 = vst.msk [vmem:[#allocation2 + $0x130] sm:$0xff] %vm264_vm3, %v1747_v32 }
  0x36   : > { %304 = vst.msk [vmem:[#allocation2 + $0x138] sm:$0xff] %vm264_vm3, %v1747_v32  ;;  %v361_v59 = vld [vmem:[#allocation2 + $0x100] sm:$0xff] }
  0x37   : > { %305 = vst.msk [vmem:[#allocation2 + $0x140] sm:$0xff] %vm264_vm3, %v1747_v32  ;;  %v362_v2 = vld [vmem:[#allocation2 + $0x108] sm:$0xff] }
  0x38   : > { %306 = vst.msk [vmem:[#allocation2 + $0x148] sm:$0xff] %vm264_vm3, %v1747_v32  ;;  %v363_v14 = vld [vmem:[#allocation2 + $0x110] sm:$0xff] }
  0x39   : > { %1622 = vmatmul.msk.bf16.gmra.mxu0 %vm632_vm2, %v1656_v16  ;;  %1630 = vmatmul.msk.bf16.gmra.mxu1 %vm632_vm2, %v1664_v17  ;;  %307 = vst.msk [vmem:[#allocation2 + $0x150] sm:$0xff] %vm264_vm3, %v1747_v32 }
  0x3a   : > { %1638 = vmatmul.msk.bf16.gmra.mxu2 %vm632_vm2, %v1672_v18  ;;  %1646 = vmatmul.msk.bf16.gmra.mxu3 %vm632_vm2, %v1680_v19  ;;  %308 = vst.msk [vmem:[#allocation2 + $0x158] sm:$0xff] %vm264_vm3, %v1747_v32  ;;  %v332_v18 = vld [vmem:[#allocation2 + $0x18] sm:$0xff] }
  0x3b   : > { %309 = vst.msk [vmem:[#allocation2 + $0x160] sm:$0xff] %vm264_vm3, %v1747_v32 }
  0x3c   : > { %310 = vst.msk [vmem:[#allocation2 + $0x168] sm:$0xff] %vm264_vm3, %v1747_v32 }
  0x3d   : > { %311 = vst.msk [vmem:[#allocation2 + $0x170] sm:$0xff] %vm264_vm3, %v1747_v32 }
  0x3e   : > { %312 = vst.msk [vmem:[#allocation2 + $0x178] sm:$0xff] %vm264_vm3, %v1747_v32 }
  0x3f   : > { %313 = vst.msk [vmem:[#allocation2 + $0x180] sm:$0xff] %vm264_vm3, %v1747_v32 }
  0x40   : > { %314 = vst.msk [vmem:[#allocation2 + $0x188] sm:$0xff] %vm264_vm3, %v1747_v32 }
  0x41   : > { %315 = vst.msk [vmem:[#allocation2 + $0x190] sm:$0xff] %vm264_vm3, %v1747_v32 }
  0x42   : > { %316 = vst.msk [vmem:[#allocation2 + $0x198] sm:$0xff] %vm264_vm3, %v1747_v32 }
  0x43   : > { %317 = vst.msk [vmem:[#allocation2 + $0x1a0] sm:$0xff] %vm264_vm3, %v1747_v32 }
  0x44   : > { %318 = vst.msk [vmem:[#allocation2 + $0x1a8] sm:$0xff] %vm264_vm3, %v1747_v32 }
  0x45   : > { %319 = vst.msk [vmem:[#allocation2 + $0x1b0] sm:$0xff] %vm264_vm3, %v1747_v32 }
  0x46   : > { %320 = vst.msk [vmem:[#allocation2 + $0x1b8] sm:$0xff] %vm264_vm3, %v1747_v32  ;;  %v377_v60 = vld [vmem:[#allocation2 + $0x180] sm:$0xff] }
  0x47   : > { %321 = vst.msk [vmem:[#allocation2 + $0x1c0] sm:$0xff] %vm264_vm3, %v1747_v32  ;;  %v378_v4 = vld [vmem:[#allocation2 + $0x188] sm:$0xff] }
  0x48   : > { %322 = vst.msk [vmem:[#allocation2 + $0x1c8] sm:$0xff] %vm264_vm3, %v1747_v32  ;;  %v379_v16 = vld [vmem:[#allocation2 + $0x190] sm:$0xff] }
  0x49   : > { %1623 = vmatmul.msk.bf16.gmra.mxu0 %vm632_vm2, %v1657_v20  ;;  %1631 = vmatmul.msk.bf16.gmra.mxu1 %vm632_vm2, %v1665_v21  ;;  %323 = vst.msk [vmem:[#allocation2 + $0x1d0] sm:$0xff] %vm264_vm3, %v1747_v32  ;;  %v348_v20 = vld [vmem:[#allocation2 + $0x98] sm:$0xff] }
  0x4a   : > { %1639 = vmatmul.msk.bf16.gmra.mxu2 %vm632_vm2, %v1673_v22  ;;  %1647 = vmatmul.msk.bf16.gmra.mxu3 %vm632_vm2, %v1681_v23  ;;  %324 = vst.msk [vmem:[#allocation2 + $0x1d8] sm:$0xff] %vm264_vm3, %v1747_v32  ;;  %v364_v22 = vld [vmem:[#allocation2 + $0x118] sm:$0xff] }
  0x4b   : > { %325 = vst.msk [vmem:[#allocation2 + $0x1e0] sm:$0xff] %vm264_vm3, %v1747_v32 }
  0x4c   : > { %326 = vst.msk [vmem:[#allocation2 + $0x1e8] sm:$0xff] %vm264_vm3, %v1747_v32 }
  0x4d   : > { %327 = vst.msk [vmem:[#allocation2 + $0x1f0] sm:$0xff] %vm264_vm3, %v1747_v32 }
  0x4e   : > { %328 = vst.msk [vmem:[#allocation2 + $0x1f8] sm:$0xff] %vm264_vm3, %v1747_v32 }
  0x59   : > { %1624 = vmatmul.msk.bf16.gmra.mxu0 %vm632_vm2, %v1658_v24  ;;  %1632 = vmatmul.msk.bf16.gmra.mxu1 %vm632_vm2, %v1666_v25 }
  0x5a   : > { %1640 = vmatmul.msk.bf16.gmra.mxu2 %vm632_vm2, %v1674_v26  ;;  %1648 = vmatmul.msk.bf16.gmra.mxu3 %vm632_vm2, %v1682_v27 }
  0x69   : > { %1625 = vmatmul.msk.bf16.gmra.mxu0 %vm632_vm2, %v1659_v28  ;;  %1633 = vmatmul.msk.bf16.gmra.mxu1 %vm632_vm2, %v1667_v29 }
  0x6a   : > { %1641 = vmatmul.msk.bf16.gmra.mxu2 %vm632_vm2, %v1675_v30  ;;  %1649 = vmatmul.msk.bf16.gmra.mxu3 %vm632_vm2, %v1683_v31 }
  0x79   : > { %1626 = vmatmul.msk.bf16.gmra.mxu0 %vm632_vm2, %v1660_v33  ;;  %1634 = vmatmul.msk.bf16.gmra.mxu1 %vm632_vm2, %v1668_v34 }
  0x7a   : > { %1642 = vmatmul.msk.bf16.gmra.mxu2 %vm632_vm2, %v1676_v35  ;;  %1650 = vmatmul.msk.bf16.gmra.mxu3 %vm632_vm2, %v1684_v36 }
  0x89   : > { %1627 = vmatmul.msk.bf16.gmra.mxu0 %vm632_vm2, %v1661_v37  ;;  %1635 = vmatmul.msk.bf16.gmra.mxu1 %vm632_vm2, %v1669_v38 }
  0x8a   : > { %1643 = vmatmul.msk.bf16.gmra.mxu2 %vm632_vm2, %v1677_v39  ;;  %1651 = vmatmul.msk.bf16.gmra.mxu3 %vm632_vm2, %v1685_v40 }
  0x96   : > { %v745_v42 = vpop.f32.mrf.mxu0  ;;  %v785_v43 = vpop.f32.mrf.mxu1 }
  0x97   : > { %v905_v44 = vadd.f32 %v745_v42, %v329_v41  ;;  %v921_v61 = vadd.f32 %v785_v43, %v345_v56 }
  0x99   : > { %970 = vst.msk [vmem:[#allocation2] sm:$0xff] %vm264_vm3, %v905_v44 }
  0x9a   : > { %986 = vst.msk [vmem:[#allocation2 + $0x80] sm:$0xff] %vm264_vm3, %v921_v61 }
  0x9d   : > { %v825_v46 = vpop.f32.mrf.mxu2  ;;  %v865_v47 = vpop.f32.mrf.mxu3 }
  0x9e   : > { %v747_v48 = vpop.f32.mrf.mxu0  ;;  %v787_v49 = vpop.f32.mrf.mxu1  ;;  %v937_v63 = vadd.f32 %v825_v46, %v361_v59  ;;  %v953_v1 = vadd.f32 %v865_v47, %v377_v60 }
  0x9f   : > { %v906_v3 = vadd.f32 %v747_v48, %v330_v62  ;;  %v922_v5 = vadd.f32 %v787_v49, %v346_v0 }
  0xa0   : > { %v1037_v50 = vld [vmem:[#allocation2] sm:$0xff]  ;;  %1002 = vst.msk [vmem:[#allocation2 + $0x100] sm:$0xff] %vm264_vm3, %v937_v63 }
  0xa1   : > { %v1105_v51 = vadd.f32 %v1971_v45, %v1037_v50  ;;  %1018 = vst.msk [vmem:[#allocation2 + $0x180] sm:$0xff] %vm264_vm3, %v953_v1  ;;  %v1053_v23 = vld [vmem:[#allocation2 + $0x80] sm:$0xff] }
  0xa2   : > { %971 = vst.msk [vmem:[#allocation2 + $0x8] sm:$0xff] %vm264_vm3, %v906_v3  ;;  %v1121_v25 = vadd.f32 %v1971_v45, %v1053_v23 }
  0xa3   : > { %v1169_v52 = vmax.f32 %v1105_v51, 0.0  ;;  %987 = vst.msk [vmem:[#allocation2 + $0x88] sm:$0xff] %vm264_vm3, %v922_v5 }
  0xa4   : > { %v1185_v35 = vmax.f32 %v1121_v25, 0.0 }
  0xa5   : > { %v1233_v53 = vpack.c.bf16 %v1169_v52, %v1169_v52  ;;  %v827_v54 = vpop.f32.mrf.mxu2  ;;  %v867_v55 = vpop.f32.mrf.mxu3 }
  0xa6   : > { %v750_v57 = vpop.f32.mrf.mxu0  ;;  %v790_v58 = vpop.f32.mrf.mxu1  ;;  %v938_v9 = vadd.f32 %v827_v54, %v362_v2  ;;  %v954_v13 = vadd.f32 %v867_v55, %v378_v4  ;;  %v1249_v41 = vpack.c.bf16 %v1185_v35, %v1185_v35 }
  0xa7   : > { %1298 = vst.msk [vmem:[%s1993_s4] sm:$0xf] %vm1297_vm4, %v1233_v53  ;;  %v907_v15 = vadd.f32 %v750_v57, %v331_v6  ;;  %v923_v17 = vadd.f32 %v790_v58, %v347_v10  ;;  %v1069_v26 = vld [vmem:[#allocation2 + $0x100] sm:$0xff] }
  0xa8   : > { %1003 = vst.msk [vmem:[#allocation2 + $0x108] sm:$0xff] %vm264_vm3, %v938_v9  ;;  %v1137_v30 = vadd.f32 %v1971_v45, %v1069_v26  ;;  %v1085_v31 = vld [vmem:[#allocation2 + $0x180] sm:$0xff] }
  0xa9   : > { %1019 = vst.msk [vmem:[#allocation2 + $0x188] sm:$0xff] %vm264_vm3, %v954_v13  ;;  %v1153_v36 = vadd.f32 %v1971_v45, %v1085_v31  ;;  %v1038_v37 = vld [vmem:[#allocation2 + $0x8] sm:$0xff]  ;;  %v365_v31 = vld [vmem:[#allocation2 + $0x120] sm:$0xff] }
  0xaa   : > { %972 = vst.msk [vmem:[#allocation2 + $0x10] sm:$0xff] %vm264_vm3, %v907_v15  ;;  %v1201_v38 = vmax.f32 %v1137_v30, 0.0  ;;  %v1106_v39 = vadd.f32 %v1971_v45, %v1038_v37  ;;  %v1054_v40 = vld [vmem:[#allocation2 + $0x88] sm:$0xff] }
  0xab   : > { %988 = vst.msk [vmem:[#allocation2 + $0x90] sm:$0xff] %vm264_vm3, %v923_v17  ;;  %v1217_v42 = vmax.f32 %v1153_v36, 0.0  ;;  %v1122_v43 = vadd.f32 %v1971_v45, %v1054_v40 }
  0xac   : > { %v1265_v46 = vpack.c.bf16 %v1201_v38, %v1201_v38  ;;  %v1170_v47 = vmax.f32 %v1106_v39, 0.0  ;;  %1314 = vst.msk [vmem:[%s1993_s4 + $0x40] sm:$0xf] %vm1297_vm4, %v1249_v41  ;;  %v381_v38 = vld [vmem:[#allocation2 + $0x1a0] sm:$0xff] }
  0xad   : > { %v830_v7 = vpop.f32.mrf.mxu2  ;;  %v870_v8 = vpop.f32.mrf.mxu3  ;;  %v1281_v50 = vpack.c.bf16 %v1217_v42, %v1217_v42  ;;  %v1186_v51 = vmax.f32 %v1122_v43, 0.0  ;;  %v334_v42 = vld [vmem:[#allocation2 + $0x28] sm:$0xff] }
  0xae   : > { %v752_v11 = vpop.f32.mrf.mxu0  ;;  %v792_v12 = vpop.f32.mrf.mxu1  ;;  %v939_v19 = vadd.f32 %v830_v7, %v363_v14  ;;  %v955_v21 = vadd.f32 %v870_v8, %v379_v16  ;;  %1330 = vst.msk [vmem:[%s1993_s4 + $0x80] sm:$0xf] %vm1297_vm4, %v1265_v46  ;;  %v1234_v54 = vpack.c.bf16 %v1170_v47, %v1170_v47  ;;  %v366_v46 = vld [vmem:[#allocation2 + $0x128] sm:$0xff] }
  0xaf   : > { %v908_v24 = vadd.f32 %v752_v11, %v332_v18  ;;  %v924_v27 = vadd.f32 %v792_v12, %v348_v20  ;;  %v1070_v44 = vld [vmem:[#allocation2 + $0x108] sm:$0xff]  ;;  %1346 = vst.msk [vmem:[%s1993_s4 + $0xc0] sm:$0xf] %vm1297_vm4, %v1281_v50  ;;  %v1250_v58 = vpack.c.bf16 %v1186_v51, %v1186_v51  ;;  %v351_v50 = vld [vmem:[#allocation2 + $0xb0] sm:$0xff] }
  0xb0   : > { %1004 = vst.msk [vmem:[#allocation2 + $0x110] sm:$0xff] %vm264_vm3, %v939_v19  ;;  %v1138_v48 = vadd.f32 %v1971_v45, %v1070_v44  ;;  %v1086_v49 = vld [vmem:[#allocation2 + $0x188] sm:$0xff] }
  0xb1   : > { %1020 = vst.msk [vmem:[#allocation2 + $0x190] sm:$0xff] %vm264_vm3, %v955_v21  ;;  %v1154_v52 = vadd.f32 %v1971_v45, %v1086_v49  ;;  %v1039_v53 = vld [vmem:[#allocation2 + $0x10] sm:$0xff]  ;;  %v380_v21 = vld [vmem:[#allocation2 + $0x198] sm:$0xff] }
  0xb2   : > { %973 = vst.msk [vmem:[#allocation2 + $0x18] sm:$0xff] %vm264_vm3, %v908_v24  ;;  %v1202_v55 = vmax.f32 %v1138_v48, 0.0  ;;  %v1107_v56 = vadd.f32 %v1971_v45, %v1039_v53  ;;  %v1055_v57 = vld [vmem:[#allocation2 + $0x90] sm:$0xff]  ;;  %v333_v24 = vld [vmem:[#allocation2 + $0x20] sm:$0xff] }
  0xb3   : > { %989 = vst.msk [vmem:[#allocation2 + $0x98] sm:$0xff] %vm264_vm3, %v924_v27  ;;  %v1218_v59 = vmax.f32 %v1154_v52, 0.0  ;;  %v1123_v60 = vadd.f32 %v1971_v45, %v1055_v57  ;;  %v349_v27 = vld [vmem:[#allocation2 + $0xa0] sm:$0xff]  ;;  %v335_v49 = vld [vmem:[#allocation2 + $0x30] sm:$0xff] }
  0xb4   : > { %1299 = vst.msk [vmem:[%s1993_s4 + $0x4] sm:$0xf] %vm1297_vm4, %v1234_v54  ;;  %v1266_v0 = vpack.c.bf16 %v1202_v55, %v1202_v55  ;;  %v1171_v1 = vmax.f32 %v1107_v56, 0.0  ;;  %v367_v52 = vld [vmem:[#allocation2 + $0x130] sm:$0xff] }
  0xb5   : > { %v832_v28 = vpop.f32.mrf.mxu2  ;;  %v2023_v29 = vpop.f32.mrf.mxu3  ;;  %1315 = vst.msk [vmem:[%s1993_s4 + $0x44] sm:$0xf] %vm1297_vm4, %v1250_v58  ;;  %v1282_v6 = vpack.c.bf16 %v1218_v59, %v1218_v59  ;;  %v1187_v7 = vmax.f32 %v1123_v60, 0.0  ;;  %v383_v56 = vld [vmem:[#allocation2 + $0x1b0] sm:$0xff]  ;;  %v336_v60 = vld [vmem:[#allocation2 + $0x38] sm:$0xff] }
  0xb6   : > { %v940_v32 = vadd.f32 %v832_v28, %v364_v22  ;;  %v2027_v33 = vpop.f32.mrf.mxu0  ;;  %v2029_v34 = vpop.f32.mrf.mxu1  ;;  %1331 = vst.msk [vmem:[%s1993_s4 + $0x84] sm:$0xf] %vm1297_vm4, %v1266_v0  ;;  %v1235_v10 = vpack.c.bf16 %v1171_v1, %v1171_v1  ;;  %v956_v30 = vadd.f32 %v2023_v29, %v380_v21  ;;  %v350_v29 = vld [vmem:[#allocation2 + $0xa8] sm:$0xff] }
  0xb7   : > { %v1071_v61 = vld [vmem:[#allocation2 + $0x110] sm:$0xff]  ;;  %1347 = vst.msk [vmem:[%s1993_s4 + $0xc4] sm:$0xf] %vm1297_vm4, %v1282_v6  ;;  %v1251_v14 = vpack.c.bf16 %v1187_v7, %v1187_v7  ;;  %v909_v37 = vadd.f32 %v2027_v33, %v333_v24  ;;  %v925_v41 = vadd.f32 %v2029_v34, %v349_v27  ;;  %v382_v33 = vld [vmem:[#allocation2 + $0x1a8] sm:$0xff] }
  0xb8   : > { %1005 = vst.msk [vmem:[#allocation2 + $0x118] sm:$0xff] %vm264_vm3, %v940_v32  ;;  %v1139_v2 = vadd.f32 %v1971_v45, %v1071_v61  ;;  %v1087_v3 = vld [vmem:[#allocation2 + $0x190] sm:$0xff] }
  0xb9   : > { %v1155_v8 = vadd.f32 %v1971_v45, %v1087_v3  ;;  %v1040_v9 = vld [vmem:[#allocation2 + $0x18] sm:$0xff]  ;;  %1300 = vst.msk [vmem:[%s1993_s4 + $0x8] sm:$0xf] %vm1297_vm4, %v1235_v10 }
  0xba   : > { %v1203_v11 = vmax.f32 %v1139_v2, 0.0  ;;  %v1108_v12 = vadd.f32 %v1971_v45, %v1040_v9  ;;  %v1056_v13 = vld [vmem:[#allocation2 + $0x98] sm:$0xff]  ;;  %1316 = vst.msk [vmem:[%s1993_s4 + $0x48] sm:$0xf] %vm1297_vm4, %v1251_v14 }
  0xbb   : > { %v1219_v15 = vmax.f32 %v1155_v8, 0.0  ;;  %v1124_v16 = vadd.f32 %v1971_v45, %v1056_v13  ;;  %1021 = vst.msk [vmem:[#allocation2 + $0x198] sm:$0xff] %vm264_vm3, %v956_v30 }
  0xbc   : > { %v1267_v18 = vpack.c.bf16 %v1203_v11, %v1203_v11  ;;  %v1172_v19 = vmax.f32 %v1108_v12, 0.0  ;;  %974 = vst.msk [vmem:[#allocation2 + $0x20] sm:$0xff] %vm264_vm3, %v909_v37 }
  0xbd   : > { %v835_v62 = vpop.f32.mrf.mxu2  ;;  %v875_v63 = vpop.f32.mrf.mxu3  ;;  %v1283_v22 = vpack.c.bf16 %v1219_v15, %v1219_v15  ;;  %v1188_v23 = vmax.f32 %v1124_v16, 0.0  ;;  %990 = vst.msk [vmem:[#allocation2 + $0xa0] sm:$0xff] %vm264_vm3, %v925_v41 }
  0xbe   : > { %v757_v4 = vpop.f32.mrf.mxu0  ;;  %v797_v5 = vpop.f32.mrf.mxu1  ;;  %1332 = vst.msk [vmem:[%s1993_s4 + $0x88] sm:$0xf] %vm1297_vm4, %v1267_v18  ;;  %v1236_v25 = vpack.c.bf16 %v1172_v19, %v1172_v19  ;;  %v941_v43 = vadd.f32 %v835_v62, %v365_v31  ;;  %v957_v44 = vadd.f32 %v875_v63, %v381_v38 }
  0xbf   : > { %v1072_v17 = vld [vmem:[#allocation2 + $0x118] sm:$0xff]  ;;  %1348 = vst.msk [vmem:[%s1993_s4 + $0xc8] sm:$0xf] %vm1297_vm4, %v1283_v22  ;;  %v1252_v28 = vpack.c.bf16 %v1188_v23, %v1188_v23  ;;  %v910_v47 = vadd.f32 %v757_v4, %v334_v42  ;;  %v926_v48 = vadd.f32 %v797_v5, %v350_v29 }
  0xc0   : > { %v1140_v20 = vadd.f32 %v1971_v45, %v1072_v17  ;;  %1301 = vst.msk [vmem:[%s1993_s4 + $0xc] sm:$0xf] %vm1297_vm4, %v1236_v25 }
  0xc1   : > { %1317 = vst.msk [vmem:[%s1993_s4 + $0x4c] sm:$0xf] %vm1297_vm4, %v1252_v28 }
  0xc2   : > { %v1204_v26 = vmax.f32 %v1140_v20, 0.0  ;;  %1006 = vst.msk [vmem:[#allocation2 + $0x120] sm:$0xff] %vm264_vm3, %v941_v43  ;;  %v1088_v61 = vld [vmem:[#allocation2 + $0x198] sm:$0xff] }
  0xc3   : > { %1022 = vst.msk [vmem:[#allocation2 + $0x1a0] sm:$0xff] %vm264_vm3, %v957_v44  ;;  %v1156_v63 = vadd.f32 %v1971_v45, %v1088_v61  ;;  %v1041_v0 = vld [vmem:[#allocation2 + $0x20] sm:$0xff] }
  0xc4   : > { %v1268_v36 = vpack.c.bf16 %v1204_v26, %v1204_v26  ;;  %975 = vst.msk [vmem:[#allocation2 + $0x28] sm:$0xff] %vm264_vm3, %v910_v47  ;;  %v1109_v2 = vadd.f32 %v1971_v45, %v1041_v0  ;;  %v1057_v3 = vld [vmem:[#allocation2 + $0xa0] sm:$0xff] }
  0xc5   : > { %v837_v32 = vpop.f32.mrf.mxu2  ;;  %v877_v35 = vpop.f32.mrf.mxu3  ;;  %991 = vst.msk [vmem:[#allocation2 + $0xa8] sm:$0xff] %vm264_vm3, %v926_v48  ;;  %v1220_v5 = vmax.f32 %v1156_v63, 0.0  ;;  %v1125_v6 = vadd.f32 %v1971_v45, %v1057_v3  ;;  %v368_v63 = vld [vmem:[#allocation2 + $0x138] sm:$0xff] }
  0xc6   : > { %v760_v39 = vpop.f32.mrf.mxu0  ;;  %v800_v40 = vpop.f32.mrf.mxu1  ;;  %1333 = vst.msk [vmem:[%s1993_s4 + $0x8c] sm:$0xf] %vm1297_vm4, %v1268_v36  ;;  %v942_v34 = vadd.f32 %v837_v32, %v366_v46  ;;  %v958_v51 = vadd.f32 %v877_v35, %v382_v33  ;;  %v1173_v8 = vmax.f32 %v1109_v2, 0.0  ;;  %v384_v2 = vld [vmem:[#allocation2 + $0x1b8] sm:$0xff] }
  0xc7   : > { %v911_v55 = vadd.f32 %v760_v39, %v335_v49  ;;  %v927_v59 = vadd.f32 %v800_v40, %v351_v50  ;;  %v1284_v11 = vpack.c.bf16 %v1220_v5, %v1220_v5  ;;  %v1189_v12 = vmax.f32 %v1125_v6, 0.0  ;;  %v337_v5 = vld [vmem:[#allocation2 + $0x40] sm:$0xff] }
  0xc8   : > { %1007 = vst.msk [vmem:[#allocation2 + $0x128] sm:$0xff] %vm264_vm3, %v942_v34  ;;  %v1237_v17 = vpack.c.bf16 %v1173_v8, %v1173_v8  ;;  %v353_v8 = vld [vmem:[#allocation2 + $0xc0] sm:$0xff] }
  0xc9   : > { %1023 = vst.msk [vmem:[#allocation2 + $0x1a8] sm:$0xff] %vm264_vm3, %v958_v51  ;;  %v1073_v7 = vld [vmem:[#allocation2 + $0x120] sm:$0xff]  ;;  %v1253_v23 = vpack.c.bf16 %v1189_v12, %v1189_v12 }
  0xca   : > { %976 = vst.msk [vmem:[#allocation2 + $0x30] sm:$0xff] %vm264_vm3, %v911_v55  ;;  %v1141_v9 = vadd.f32 %v1971_v45, %v1073_v7  ;;  %v1089_v10 = vld [vmem:[#allocation2 + $0x1a0] sm:$0xff] }
  0xcb   : > { %992 = vst.msk [vmem:[#allocation2 + $0xb0] sm:$0xff] %vm264_vm3, %v927_v59  ;;  %v1157_v13 = vadd.f32 %v1971_v45, %v1089_v10  ;;  %v1042_v14 = vld [vmem:[#allocation2 + $0x28] sm:$0xff]  ;;  %v369_v10 = vld [vmem:[#allocation2 + $0x140] sm:$0xff] }
  0xcc   : > { %v1205_v18 = vmax.f32 %v1141_v9, 0.0  ;;  %v1110_v19 = vadd.f32 %v1971_v45, %v1042_v14  ;;  %v1058_v20 = vld [vmem:[#allocation2 + $0xa8] sm:$0xff]  ;;  %1349 = vst.msk [vmem:[%s1993_s4 + $0xcc] sm:$0xf] %vm1297_vm4, %v1284_v11  ;;  %v385_v12 = vld [vmem:[#allocation2 + $0x1c0] sm:$0xff] }
  0xcd   : > { %v840_v53 = vpop.f32.mrf.mxu2  ;;  %v880_v54 = vpop.f32.mrf.mxu3  ;;  %v1221_v24 = vmax.f32 %v1157_v13, 0.0  ;;  %v1126_v25 = vadd.f32 %v1971_v45, %v1058_v20  ;;  %1302 = vst.msk [vmem:[%s1993_s4 + $0x10] sm:$0xf] %vm1297_vm4, %v1237_v17  ;;  %v338_v13 = vld [vmem:[#allocation2 + $0x48] sm:$0xff] }
  0xce   : > { %v762_v57 = vpop.f32.mrf.mxu0  ;;  %v2084_v58 = vpop.f32.mrf.mxu1  ;;  %v943_v62 = vadd.f32 %v840_v53, %v367_v52  ;;  %v959_v1 = vadd.f32 %v880_v54, %v383_v56  ;;  %v1269_v27 = vpack.c.bf16 %v1205_v18, %v1205_v18  ;;  %v1174_v28 = vmax.f32 %v1110_v19, 0.0  ;;  %1318 = vst.msk [vmem:[%s1993_s4 + $0x50] sm:$0xf] %vm1297_vm4, %v1253_v23  ;;  %v354_v18 = vld [vmem:[#allocation2 + $0xc8] sm:$0xff] }
  0xcf   : > { %v912_v4 = vadd.f32 %v762_v57, %v336_v60  ;;  %v1074_v26 = vld [vmem:[#allocation2 + $0x128] sm:$0xff]  ;;  %v1285_v32 = vpack.c.bf16 %v1221_v24, %v1221_v24  ;;  %v1190_v35 = vmax.f32 %v1126_v25, 0.0  ;;  %v352_v57 = vld [vmem:[#allocation2 + $0xb8] sm:$0xff]  ;;  %v339_v25 = vld [vmem:[#allocation2 + $0x50] sm:$0xff] }
  0xd0   : > { %1008 = vst.msk [vmem:[#allocation2 + $0x130] sm:$0xff] %vm264_vm3, %v943_v62  ;;  %v1142_v30 = vadd.f32 %v1971_v45, %v1074_v26  ;;  %v1090_v31 = vld [vmem:[#allocation2 + $0x1a8] sm:$0xff]  ;;  %v1238_v38 = vpack.c.bf16 %v1174_v28, %v1174_v28 }
  0xd1   : > { %1024 = vst.msk [vmem:[#allocation2 + $0x1b0] sm:$0xff] %vm264_vm3, %v959_v1  ;;  %v1158_v36 = vadd.f32 %v1971_v45, %v1090_v31  ;;  %v1043_v37 = vld [vmem:[#allocation2 + $0x30] sm:$0xff]  ;;  %v1254_v42 = vpack.c.bf16 %v1190_v35, %v1190_v35  ;;  %v370_v23 = vld [vmem:[#allocation2 + $0x148] sm:$0xff] }
  0xd2   : > { %977 = vst.msk [vmem:[#allocation2 + $0x38] sm:$0xff] %vm264_vm3, %v912_v4  ;;  %v1206_v39 = vmax.f32 %v1142_v30, 0.0  ;;  %v1111_v40 = vadd.f32 %v1971_v45, %v1043_v37  ;;  %v1059_v41 = vld [vmem:[#allocation2 + $0xb0] sm:$0xff]  ;;  %v928_v4 = vadd.f32 %v2084_v58, %v352_v57  ;;  %v386_v24 = vld [vmem:[#allocation2 + $0x1c8] sm:$0xff] }
  0xd3   : > { %1334 = vst.msk [vmem:[%s1993_s4 + $0x90] sm:$0xf] %vm1297_vm4, %v1269_v27  ;;  %v1222_v43 = vmax.f32 %v1158_v36, 0.0  ;;  %v1127_v29 = vadd.f32 %v1971_v45, %v1059_v41  ;;  %v355_v27 = vld [vmem:[#allocation2 + $0xd0] sm:$0xff] }
  0xd4   : > { %1350 = vst.msk [vmem:[%s1993_s4 + $0xd0] sm:$0xf] %vm1297_vm4, %v1285_v32  ;;  %v1270_v46 = vpack.c.bf16 %v1206_v39, %v1206_v39  ;;  %v1175_v47 = vmax.f32 %v1111_v40, 0.0  ;;  %v371_v30 = vld [vmem:[#allocation2 + $0x150] sm:$0xff] }
  0xd5   : > { %v2098_v15 = vpop.f32.mrf.mxu2  ;;  %v2100_v16 = vpop.f32.mrf.mxu3  ;;  %1303 = vst.msk [vmem:[%s1993_s4 + $0x14] sm:$0xf] %vm1297_vm4, %v1238_v38  ;;  %v1286_v49 = vpack.c.bf16 %v1222_v43, %v1222_v43  ;;  %v1191_v34 = vmax.f32 %v1127_v29, 0.0 }
  0xd6   : > { %v2104_v21 = vpop.f32.mrf.mxu0  ;;  %v2106_v22 = vpop.f32.mrf.mxu1  ;;  %1319 = vst.msk [vmem:[%s1993_s4 + $0x54] sm:$0xf] %vm1297_vm4, %v1254_v42  ;;  %v1239_v54 = vpack.c.bf16 %v1175_v47, %v1175_v47  ;;  %v944_v7 = vadd.f32 %v2098_v15, %v368_v63  ;;  %v960_v9 = vadd.f32 %v2100_v16, %v384_v2 }
  0xd7   : > { %v1075_v44 = vld [vmem:[#allocation2 + $0x130] sm:$0xff]  ;;  %1335 = vst.msk [vmem:[%s1993_s4 + $0x94] sm:$0xf] %vm1297_vm4, %v1270_v46  ;;  %v1255_v61 = vpack.c.bf16 %v1191_v34, %v1191_v34  ;;  %v913_v11 = vadd.f32 %v2104_v21, %v337_v5  ;;  %v929_v58 = vadd.f32 %v2106_v22, %v353_v8 }
  0xd8   : > { %v1143_v33 = vadd.f32 %v1971_v45, %v1075_v44  ;;  %v1091_v48 = vld [vmem:[#allocation2 + $0x1b0] sm:$0xff]  ;;  %1351 = vst.msk [vmem:[%s1993_s4 + $0xd4] sm:$0xf] %vm1297_vm4, %v1286_v49 }
  0xd9   : > { %v1159_v50 = vadd.f32 %v1971_v45, %v1091_v48  ;;  %v1044_v51 = vld [vmem:[#allocation2 + $0x38] sm:$0xff]  ;;  %1304 = vst.msk [vmem:[%s1993_s4 + $0x18] sm:$0xf] %vm1297_vm4, %v1239_v54 }
  0xda   : > { %v1207_v55 = vmax.f32 %v1143_v33, 0.0  ;;  %v1112_v56 = vadd.f32 %v1971_v45, %v1044_v51  ;;  %1320 = vst.msk [vmem:[%s1993_s4 + $0x58] sm:$0xf] %vm1297_vm4, %v1255_v61 }
  0xdb   : > { %v1223_v62 = vmax.f32 %v1159_v50, 0.0  ;;  %993 = vst.msk [vmem:[#allocation2 + $0xb8] sm:$0xff] %vm264_vm3, %v928_v4 }
  0xdc   : > { %v1271_v0 = vpack.c.bf16 %v1207_v55, %v1207_v55  ;;  %v1176_v1 = vmax.f32 %v1112_v56, 0.0  ;;  %1009 = vst.msk [vmem:[#allocation2 + $0x138] sm:$0xff] %vm264_vm3, %v944_v7 }
  0xdd   : > { %v845_v52 = vpop.f32.mrf.mxu2  ;;  %v885_v53 = vpop.f32.mrf.mxu3  ;;  %v1287_v3 = vpack.c.bf16 %v1223_v62, %v1223_v62  ;;  %1025 = vst.msk [vmem:[#allocation2 + $0x1b8] sm:$0xff] %vm264_vm3, %v960_v9 }
  0xde   : > { %v767_v59 = vpop.f32.mrf.mxu0  ;;  %v807_v60 = vpop.f32.mrf.mxu1  ;;  %1336 = vst.msk [vmem:[%s1993_s4 + $0x98] sm:$0xf] %vm1297_vm4, %v1271_v0  ;;  %v1240_v6 = vpack.c.bf16 %v1176_v1, %v1176_v1  ;;  %v945_v15 = vadd.f32 %v845_v52, %v369_v10  ;;  %v961_v16 = vadd.f32 %v885_v53, %v385_v12 }
  0xdf   : > { %1352 = vst.msk [vmem:[%s1993_s4 + $0xd8] sm:$0xf] %vm1297_vm4, %v1287_v3  ;;  %v914_v21 = vadd.f32 %v767_v59, %v338_v13  ;;  %v930_v22 = vadd.f32 %v807_v60, %v354_v18 }
  0xe0   : > { %1305 = vst.msk [vmem:[%s1993_s4 + $0x1c] sm:$0xf] %vm1297_vm4, %v1240_v6 }
  0xe1   : > { %978 = vst.msk [vmem:[#allocation2 + $0x40] sm:$0xff] %vm264_vm3, %v913_v11 }
  0xe2   : > { %994 = vst.msk [vmem:[#allocation2 + $0xc0] sm:$0xff] %vm264_vm3, %v929_v58  ;;  %v1060_v31 = vld [vmem:[#allocation2 + $0xb8] sm:$0xff] }
  0xe3   : > { %1010 = vst.msk [vmem:[#allocation2 + $0x140] sm:$0xff] %vm264_vm3, %v945_v15  ;;  %v1128_v35 = vadd.f32 %v1971_v45, %v1060_v31  ;;  %v1076_v36 = vld [vmem:[#allocation2 + $0x138] sm:$0xff] }
  0xe4   : > { %1026 = vst.msk [vmem:[#allocation2 + $0x1c0] sm:$0xff] %vm264_vm3, %v961_v16  ;;  %v1144_v40 = vadd.f32 %v1971_v45, %v1076_v36  ;;  %v1092_v41 = vld [vmem:[#allocation2 + $0x1b8] sm:$0xff] }
  0xe5   : > { %v847_v14 = vpop.f32.mrf.mxu2  ;;  %v887_v17 = vpop.f32.mrf.mxu3  ;;  %979 = vst.msk [vmem:[#allocation2 + $0x48] sm:$0xff] %vm264_vm3, %v914_v21  ;;  %v1192_v29 = vmax.f32 %v1128_v35, 0.0  ;;  %v1160_v44 = vadd.f32 %v1971_v45, %v1092_v41  ;;  %v372_v41 = vld [vmem:[#allocation2 + $0x158] sm:$0xff] }
  0xe6   : > { %v770_v19 = vpop.f32.mrf.mxu0  ;;  %v810_v20 = vpop.f32.mrf.mxu1  ;;  %v946_v26 = vadd.f32 %v847_v14, %v370_v23  ;;  %v962_v28 = vadd.f32 %v887_v17, %v386_v24  ;;  %995 = vst.msk [vmem:[#allocation2 + $0xc8] sm:$0xff] %vm264_vm3, %v930_v22  ;;  %v1208_v47 = vmax.f32 %v1144_v40, 0.0 }
  0xe7   : > { %v915_v32 = vadd.f32 %v770_v19, %v339_v25  ;;  %v931_v37 = vadd.f32 %v810_v20, %v355_v27  ;;  %v1256_v34 = vpack.c.bf16 %v1192_v29, %v1192_v29  ;;  %v1224_v50 = vmax.f32 %v1160_v44, 0.0  ;;  %v387_v27 = vld [vmem:[#allocation2 + $0x1d0] sm:$0xff] }
  0xe8   : > { %1011 = vst.msk [vmem:[#allocation2 + $0x148] sm:$0xff] %vm264_vm3, %v946_v26  ;;  %v1045_v46 = vld [vmem:[#allocation2 + $0x40] sm:$0xff]  ;;  %v1272_v53 = vpack.c.bf16 %v1208_v47, %v1208_v47  ;;  %v388_v47 = vld [vmem:[#allocation2 + $0x1d8] sm:$0xff] }
  0xe9   : > { %1027 = vst.msk [vmem:[#allocation2 + $0x1c8] sm:$0xff] %vm264_vm3, %v962_v28  ;;  %v1113_v33 = vadd.f32 %v1971_v45, %v1045_v46  ;;  %v1061_v48 = vld [vmem:[#allocation2 + $0xc0] sm:$0xff]  ;;  %v1288_v57 = vpack.c.bf16 %v1224_v50, %v1224_v50 }
  0xea   : > { %980 = vst.msk [vmem:[#allocation2 + $0x50] sm:$0xff] %vm264_vm3, %v915_v32  ;;  %v1129_v51 = vadd.f32 %v1971_v45, %v1061_v48  ;;  %v1077_v52 = vld [vmem:[#allocation2 + $0x140] sm:$0xff]  ;;  %v340_v32 = vld [vmem:[#allocation2 + $0x58] sm:$0xff] }
  0xeb   : > { %996 = vst.msk [vmem:[#allocation2 + $0xd0] sm:$0xff] %vm264_vm3, %v931_v37  ;;  %v1177_v54 = vmax.f32 %v1113_v33, 0.0  ;;  %v1145_v55 = vadd.f32 %v1971_v45, %v1077_v52  ;;  %v1093_v56 = vld [vmem:[#allocation2 + $0x1c0] sm:$0xff]  ;;  %v356_v37 = vld [vmem:[#allocation2 + $0xd8] sm:$0xff] }
  0xec   : > { %1321 = vst.msk [vmem:[%s1993_s4 + $0x5c] sm:$0xf] %vm1297_vm4, %v1256_v34  ;;  %v1193_v59 = vmax.f32 %v1129_v51, 0.0  ;;  %v1161_v60 = vadd.f32 %v1971_v45, %v1093_v56  ;;  %v1046_v61 = vld [vmem:[#allocation2 + $0x48] sm:$0xff]  ;;  %v341_v48 = vld [vmem:[#allocation2 + $0x60] sm:$0xff] }
  0xed   : > { %v850_v38 = vpop.f32.mrf.mxu2  ;;  %v2159_v39 = vpop.f32.mrf.mxu3  ;;  %1337 = vst.msk [vmem:[%s1993_s4 + $0x9c] sm:$0xf] %vm1297_vm4, %v1272_v53  ;;  %v1241_v62 = vpack.c.bf16 %v1177_v54, %v1177_v54  ;;  %v1209_v63 = vmax.f32 %v1145_v55, 0.0  ;;  %v1114_v0 = vadd.f32 %v1971_v45, %v1046_v61  ;;  %v1062_v1 = vld [vmem:[#allocation2 + $0xc8] sm:$0xff]  ;;  %v357_v51 = vld [vmem:[#allocation2 + $0xe0] sm:$0xff] }
  0xee   : > { %v947_v42 = vadd.f32 %v850_v38, %v371_v30  ;;  %v2163_v43 = vpop.f32.mrf.mxu0  ;;  %v2169_v49 = vpop.f32.mrf.mxu1  ;;  %1353 = vst.msk [vmem:[%s1993_s4 + $0xdc] sm:$0xf] %vm1297_vm4, %v1288_v57  ;;  %v1257_v2 = vpack.c.bf16 %v1193_v59, %v1193_v59  ;;  %v1225_v3 = vmax.f32 %v1161_v60, 0.0  ;;  %v1130_v4 = vadd.f32 %v1971_v45, %v1062_v1  ;;  %v373_v52 = vld [vmem:[#allocation2 + $0x160] sm:$0xff]  ;;  %v342_v55 = vld [vmem:[#allocation2 + $0x68] sm:$0xff] }
  0xef   : > { %v1078_v5 = vld [vmem:[#allocation2 + $0x148] sm:$0xff]  ;;  %1306 = vst.msk [vmem:[%s1993_s4 + $0x20] sm:$0xf] %vm1297_vm4, %v1241_v62  ;;  %v1273_v8 = vpack.c.bf16 %v1209_v63, %v1209_v63  ;;  %v1178_v9 = vmax.f32 %v1114_v0, 0.0  ;;  %v963_v40 = vadd.f32 %v2159_v39, %v387_v27  ;;  %v916_v46 = vadd.f32 %v2163_v43, %v340_v32  ;;  %v389_v54 = vld [vmem:[#allocation2 + $0x1e0] sm:$0xff] }
  0xf0   : > { %1012 = vst.msk [vmem:[#allocation2 + $0x150] sm:$0xff] %vm264_vm3, %v947_v42  ;;  %v1146_v10 = vadd.f32 %v1971_v45, %v1078_v5  ;;  %v1094_v11 = vld [vmem:[#allocation2 + $0x1c8] sm:$0xff]  ;;  %v1289_v58 = vpack.c.bf16 %v1225_v3, %v1225_v3  ;;  %v1194_v13 = vmax.f32 %v1130_v4, 0.0  ;;  %v932_v33 = vadd.f32 %v2169_v49, %v356_v37 }
  0xf1   : > { %1322 = vst.msk [vmem:[%s1993_s4 + $0x60] sm:$0xf] %vm1297_vm4, %v1257_v2  ;;  %v1162_v14 = vadd.f32 %v1971_v45, %v1094_v11  ;;  %v1047_v17 = vld [vmem:[#allocation2 + $0x50] sm:$0xff]  ;;  %v1242_v15 = vpack.c.bf16 %v1178_v9, %v1178_v9  ;;  %v358_v56 = vld [vmem:[#allocation2 + $0xe8] sm:$0xff] }
  0xf2   : > { %1338 = vst.msk [vmem:[%s1993_s4 + $0xa0] sm:$0xf] %vm1297_vm4, %v1273_v8  ;;  %v1210_v18 = vmax.f32 %v1146_v10, 0.0  ;;  %v1115_v19 = vadd.f32 %v1971_v45, %v1047_v17  ;;  %v1063_v20 = vld [vmem:[#allocation2 + $0xd0] sm:$0xff]  ;;  %v1258_v16 = vpack.c.bf16 %v1194_v13, %v1194_v13  ;;  %v374_v60 = vld [vmem:[#allocation2 + $0x168] sm:$0xff] }
  0xf3   : > { %1354 = vst.msk [vmem:[%s1993_s4 + $0xe0] sm:$0xf] %vm1297_vm4, %v1289_v58  ;;  %v1226_v23 = vmax.f32 %v1162_v14, 0.0  ;;  %v1131_v21 = vadd.f32 %v1971_v45, %v1063_v20  ;;  %v390_v63 = vld [vmem:[#allocation2 + $0x1e8] sm:$0xff]  ;;  %v343_v2 = vld [vmem:[#allocation2 + $0x70] sm:$0xff] }
  0xf4   : > { %1307 = vst.msk [vmem:[%s1993_s4 + $0x24] sm:$0xf] %vm1297_vm4, %v1242_v15  ;;  %v1274_v22 = vpack.c.bf16 %v1210_v18, %v1210_v18  ;;  %v1179_v25 = vmax.f32 %v1115_v19, 0.0 }
  0xf5   : > { %v852_v6 = vpop.f32.mrf.mxu2  ;;  %v892_v7 = vpop.f32.mrf.mxu3  ;;  %1323 = vst.msk [vmem:[%s1993_s4 + $0x64] sm:$0xf] %vm1297_vm4, %v1258_v16  ;;  %v1290_v30 = vpack.c.bf16 %v1226_v23, %v1226_v23  ;;  %v1195_v31 = vmax.f32 %v1131_v21, 0.0 }
  0xf6   : > { %v775_v12 = vpop.f32.mrf.mxu0  ;;  %v815_v28 = vpop.f32.mrf.mxu1  ;;  %1339 = vst.msk [vmem:[%s1993_s4 + $0xa4] sm:$0xf] %vm1297_vm4, %v1274_v22  ;;  %v1243_v35 = vpack.c.bf16 %v1179_v25, %v1179_v25  ;;  %v948_v50 = vadd.f32 %v852_v6, %v372_v41  ;;  %v964_v39 = vadd.f32 %v892_v7, %v388_v47 }
  0xf7   : > { %v1079_v24 = vld [vmem:[#allocation2 + $0x150] sm:$0xff]  ;;  %1355 = vst.msk [vmem:[%s1993_s4 + $0xe4] sm:$0xf] %vm1297_vm4, %v1290_v30  ;;  %v1259_v38 = vpack.c.bf16 %v1195_v31, %v1195_v31  ;;  %v917_v53 = vadd.f32 %v775_v12, %v341_v48  ;;  %v933_v43 = vadd.f32 %v815_v28, %v357_v51 }
  0xf8   : > { %v1147_v26 = vadd.f32 %v1971_v45, %v1079_v24  ;;  %1308 = vst.msk [vmem:[%s1993_s4 + $0x28] sm:$0xf] %vm1297_vm4, %v1243_v35 }
  0xf9   : > { %1324 = vst.msk [vmem:[%s1993_s4 + $0x68] sm:$0xf] %vm1297_vm4, %v1259_v38 }
  0xfa   : > { %v1211_v36 = vmax.f32 %v1147_v26, 0.0  ;;  %1028 = vst.msk [vmem:[#allocation2 + $0x1d0] sm:$0xff] %vm264_vm3, %v963_v40 }
  0xfb   : > { %981 = vst.msk [vmem:[#allocation2 + $0x58] sm:$0xff] %vm264_vm3, %v916_v46 }
  0xfc   : > { %v1275_v44 = vpack.c.bf16 %v1211_v36, %v1211_v36  ;;  %997 = vst.msk [vmem:[#allocation2 + $0xd8] sm:$0xff] %vm264_vm3, %v932_v33 }
  0xfd   : > { %v855_v42 = vpop.f32.mrf.mxu2  ;;  %v895_v29 = vpop.f32.mrf.mxu3  ;;  %1013 = vst.msk [vmem:[#allocation2 + $0x158] sm:$0xff] %vm264_vm3, %v948_v50 }
  0xfe   : > { %v777_v34 = vpop.f32.mrf.mxu0  ;;  %1340 = vst.msk [vmem:[%s1993_s4 + $0xa8] sm:$0xf] %vm1297_vm4, %v1275_v44  ;;  %v949_v49 = vadd.f32 %v855_v42, %v373_v52  ;;  %v817_v57 = vpop.f32.mrf.mxu1  ;;  %v965_v59 = vadd.f32 %v895_v29, %v389_v54 }
  0xff   : > { %1029 = vst.msk [vmem:[#allocation2 + $0x1d8] sm:$0xff] %vm264_vm3, %v964_v39  ;;  %v918_v62 = vadd.f32 %v777_v34, %v342_v55  ;;  %v934_v1 = vadd.f32 %v817_v57, %v358_v56 }
 0x100   : > { %982 = vst.msk [vmem:[#allocation2 + $0x60] sm:$0xff] %vm264_vm3, %v917_v53 }
 0x101   : > { %998 = vst.msk [vmem:[#allocation2 + $0xe0] sm:$0xff] %vm264_vm3, %v933_v43  ;;  %v1095_v3 = vld [vmem:[#allocation2 + $0x1d0] sm:$0xff] }
 0x102   : > { %1014 = vst.msk [vmem:[#allocation2 + $0x160] sm:$0xff] %vm264_vm3, %v949_v49  ;;  %v1163_v5 = vadd.f32 %v1971_v45, %v1095_v3  ;;  %v1048_v6 = vld [vmem:[#allocation2 + $0x58] sm:$0xff]  ;;  %v391_v3 = vld [vmem:[#allocation2 + $0x1f0] sm:$0xff] }
 0x103   : > { %1030 = vst.msk [vmem:[#allocation2 + $0x1e0] sm:$0xff] %vm264_vm3, %v965_v59  ;;  %v1116_v9 = vadd.f32 %v1971_v45, %v1048_v6  ;;  %v1064_v10 = vld [vmem:[#allocation2 + $0xd8] sm:$0xff] }
 0x104   : > { %983 = vst.msk [vmem:[#allocation2 + $0x68] sm:$0xff] %vm264_vm3, %v918_v62  ;;  %v1227_v12 = vmax.f32 %v1163_v5, 0.0  ;;  %v1132_v58 = vadd.f32 %v1971_v45, %v1064_v10  ;;  %v1080_v13 = vld [vmem:[#allocation2 + $0x158] sm:$0xff]  ;;  %v359_v62 = vld [vmem:[#allocation2 + $0xf0] sm:$0xff] }
 0x105   : > { %v857_v61 = vpop.f32.mrf.mxu2  ;;  %v897_v0 = vpop.f32.mrf.mxu3  ;;  %999 = vst.msk [vmem:[#allocation2 + $0xe8] sm:$0xff] %vm264_vm3, %v934_v1  ;;  %v1180_v14 = vmax.f32 %v1116_v9, 0.0  ;;  %v1148_v17 = vadd.f32 %v1971_v45, %v1080_v13  ;;  %v375_v1 = vld [vmem:[#allocation2 + $0x170] sm:$0xff]  ;;  %v344_v6 = vld [vmem:[#allocation2 + $0x78] sm:$0xff] }
 0x106   : > { %v950_v4 = vadd.f32 %v857_v61, %v374_v60  ;;  %v966_v7 = vadd.f32 %v897_v0, %v390_v63  ;;  %v780_v8 = vpop.f32.mrf.mxu0  ;;  %v1096_v15 = vld [vmem:[#allocation2 + $0x1d8] sm:$0xff]  ;;  %v1291_v18 = vpack.c.bf16 %v1227_v12, %v1227_v12  ;;  %v1196_v19 = vmax.f32 %v1132_v58, 0.0  ;;  %v820_v36 = vpop.f32.mrf.mxu1  ;;  %v1721_v60 = vld [vmem:[%s2304_s2] ss:$0 sm:$0xff] }
 0x107   : > { %v919_v11 = vadd.f32 %v780_v8, %v343_v2  ;;  %v1164_v20 = vadd.f32 %v1971_v45, %v1096_v15  ;;  %v1049_v16 = vld [vmem:[#allocation2 + $0x60] sm:$0xff]  ;;  %v1244_v23 = vpack.c.bf16 %v1180_v14, %v1180_v14  ;;  %v1212_v21 = vmax.f32 %v1148_v17, 0.0  ;;  %v360_v10 = vld [vmem:[#allocation2 + $0xf8] sm:$0xff] }
 0x108   : > { %1015 = vst.msk [vmem:[#allocation2 + $0x168] sm:$0xff] %vm264_vm3, %v950_v4  ;;  %v1117_v24 = vadd.f32 %v1971_v45, %v1049_v16  ;;  %v1065_v22 = vld [vmem:[#allocation2 + $0xe0] sm:$0xff]  ;;  %v1260_v25 = vpack.c.bf16 %v1196_v19, %v1196_v19  ;;  %v935_v5 = vadd.f32 %v820_v36, %v359_v62  ;;  %v376_v58 = vld [vmem:[#allocation2 + $0x178] sm:$0xff] }
 0x109   : > { %1031 = vst.msk [vmem:[#allocation2 + $0x1e8] sm:$0xff] %vm264_vm3, %v966_v7  ;;  %v1228_v26 = vmax.f32 %v1164_v20, 0.0  ;;  %v1133_v27 = vadd.f32 %v1971_v45, %v1065_v22  ;;  %v1081_v28 = vld [vmem:[#allocation2 + $0x160] sm:$0xff]  ;;  %v1276_v30 = vpack.c.bf16 %v1212_v21, %v1212_v21  ;;  %v392_v17 = vld [vmem:[#allocation2 + $0x1f8] sm:$0xff] }
 0x10a   : > { %984 = vst.msk [vmem:[#allocation2 + $0x70] sm:$0xff] %vm264_vm3, %v919_v11  ;;  %v1181_v31 = vmax.f32 %v1117_v24, 0.0  ;;  %v1149_v32 = vadd.f32 %v1971_v45, %v1081_v28  ;;  %v1097_v35 = vld [vmem:[#allocation2 + $0x1e0] sm:$0xff] }
 0x10b   : > { %1356 = vst.msk [vmem:[%s1993_s4 + $0xe8] sm:$0xf] %vm1297_vm4, %v1291_v18  ;;  %v1292_v37 = vpack.c.bf16 %v1228_v26, %v1228_v26  ;;  %v1197_v38 = vmax.f32 %v1133_v27, 0.0  ;;  %v1165_v40 = vadd.f32 %v1971_v45, %v1097_v35  ;;  %v1050_v41 = vld [vmem:[#allocation2 + $0x68] sm:$0xff] }
 0x10c   : > { %1309 = vst.msk [vmem:[%s1993_s4 + $0x2c] sm:$0xf] %vm1297_vm4, %v1244_v23  ;;  %v1245_v29 = vpack.c.bf16 %v1181_v31, %v1181_v31  ;;  %v1213_v44 = vmax.f32 %v1149_v32, 0.0  ;;  %v1118_v46 = vadd.f32 %v1971_v45, %v1050_v41  ;;  %v1066_v47 = vld [vmem:[#allocation2 + $0xe8] sm:$0xff] }
 0x10d   : > { %1325 = vst.msk [vmem:[%s1993_s4 + $0x6c] sm:$0xf] %vm1297_vm4, %v1260_v25  ;;  %v860_v42 = vpop.f32.mrf.mxu2  ;;  %v900_v33 = vpop.f32.mrf.mxu3  ;;  %v1261_v48 = vpack.c.bf16 %v1197_v38, %v1197_v38  ;;  %v1229_v34 = vmax.f32 %v1165_v40, 0.0  ;;  %v1134_v50 = vadd.f32 %v1971_v45, %v1066_v47 }
 0x10e   : > { %1341 = vst.msk [vmem:[%s1993_s4 + $0xac] sm:$0xf] %vm1297_vm4, %v1276_v30  ;;  %v1277_v39 = vpack.c.bf16 %v1213_v44, %v1213_v44  ;;  %v1182_v52 = vmax.f32 %v1118_v46, 0.0  ;;  %v782_v7 = vpop.f32.mrf.mxu0  ;;  %v951_v9 = vadd.f32 %v860_v42, %v375_v1  ;;  %v822_v11 = vpop.f32.mrf.mxu1  ;;  %v967_v12 = vadd.f32 %v900_v33, %v391_v3 }
 0x10f   : > { %1357 = vst.msk [vmem:[%s1993_s4 + $0xec] sm:$0xf] %vm1297_vm4, %v1292_v37  ;;  %v1082_v51 = vld [vmem:[#allocation2 + $0x168] sm:$0xff]  ;;  %v1293_v43 = vpack.c.bf16 %v1229_v34, %v1229_v34  ;;  %v1198_v55 = vmax.f32 %v1134_v50, 0.0  ;;  %v920_v14 = vadd.f32 %v782_v7, %v344_v6  ;;  %v936_v18 = vadd.f32 %v822_v11, %v360_v10 }
 0x110   : > { %1310 = vst.msk [vmem:[%s1993_s4 + $0x30] sm:$0xf] %vm1297_vm4, %v1245_v29  ;;  %v1150_v53 = vadd.f32 %v1971_v45, %v1082_v51  ;;  %v1098_v54 = vld [vmem:[#allocation2 + $0x1e8] sm:$0xff]  ;;  %v1246_v57 = vpack.c.bf16 %v1182_v52, %v1182_v52 }
 0x111   : > { %1326 = vst.msk [vmem:[%s1993_s4 + $0x70] sm:$0xf] %vm1297_vm4, %v1261_v48  ;;  %v1166_v49 = vadd.f32 %v1971_v45, %v1098_v54  ;;  %v1051_v56 = vld [vmem:[#allocation2 + $0x70] sm:$0xff]  ;;  %v1262_v63 = vpack.c.bf16 %v1198_v55, %v1198_v55 }
 0x112   : > { %1342 = vst.msk [vmem:[%s1993_s4 + $0xb0] sm:$0xf] %vm1297_vm4, %v1277_v39  ;;  %v1214_v59 = vmax.f32 %v1150_v53, 0.0  ;;  %v1119_v61 = vadd.f32 %v1721_v60, %v1051_v56 }
 0x113   : > { %1358 = vst.msk [vmem:[%s1993_s4 + $0xf0] sm:$0xf] %vm1297_vm4, %v1293_v43  ;;  %v1230_v0 = vmax.f32 %v1166_v49, 0.0 }
 0x114   : > { %1311 = vst.msk [vmem:[%s1993_s4 + $0x34] sm:$0xf] %vm1297_vm4, %v1246_v57  ;;  %v1278_v45 = vpack.c.bf16 %v1214_v59, %v1214_v59  ;;  %v1183_v2 = vmax.f32 %v1119_v61, 0.0 }
 0x115   : > { %1327 = vst.msk [vmem:[%s1993_s4 + $0x74] sm:$0xf] %vm1297_vm4, %v1262_v63  ;;  %v1294_v4 = vpack.c.bf16 %v1230_v0, %v1230_v0  ;;  %v862_v13 = vpop.f32.mrf.mxu2  ;;  %v902_v15 = vpop.f32.mrf.mxu3 }
 0x116   : > { %1343 = vst.msk [vmem:[%s1993_s4 + $0xb4] sm:$0xf] %vm1297_vm4, %v1278_v45  ;;  %v1247_v8 = vpack.c.bf16 %v1183_v2, %v1183_v2  ;;  %v952_v19 = vadd.f32 %v862_v13, %v376_v58  ;;  %v968_v20 = vadd.f32 %v902_v15, %v392_v17 }
 0x117   : > { %1359 = vst.msk [vmem:[%s1993_s4 + $0xf4] sm:$0xf] %vm1297_vm4, %v1294_v4 }
 0x118   : > { %1312 = vst.msk [vmem:[%s1993_s4 + $0x38] sm:$0xf] %vm1297_vm4, %v1247_v8 }
 0x119   : > { %1000 = vst.msk [vmem:[#allocation2 + $0xf0] sm:$0xff] %vm264_vm3, %v935_v5 }
 0x11a   : > { %1016 = vst.msk [vmem:[#allocation2 + $0x170] sm:$0xff] %vm264_vm3, %v951_v9 }
 0x11b   : > { %1032 = vst.msk [vmem:[#allocation2 + $0x1f0] sm:$0xff] %vm264_vm3, %v967_v12 }
 0x11c   : > { %985 = vst.msk [vmem:[#allocation2 + $0x78] sm:$0xff] %vm264_vm3, %v920_v14 }
 0x11d   : > { %1001 = vst.msk [vmem:[#allocation2 + $0xf8] sm:$0xff] %vm264_vm3, %v936_v18 }
 0x11e   : > { %1017 = vst.msk [vmem:[#allocation2 + $0x178] sm:$0xff] %vm264_vm3, %v952_v19 }
 0x11f   : > { %1033 = vst.msk [vmem:[#allocation2 + $0x1f8] sm:$0xff] %vm264_vm3, %v968_v20 }
 0x120   : > { %v1067_v16 = vld [vmem:[#allocation2 + $0xf0] sm:$0xff] }
 0x121   : > { %v1135_v23 = vadd.f32 %v1721_v60, %v1067_v16  ;;  %v1083_v21 = vld [vmem:[#allocation2 + $0x170] sm:$0xff] }
 0x122   : > { %v1151_v24 = vadd.f32 %v1721_v60, %v1083_v21  ;;  %v1099_v22 = vld [vmem:[#allocation2 + $0x1f0] sm:$0xff] }
 0x123   : > { %v1199_v25 = vmax.f32 %v1135_v23, 0.0  ;;  %v1167_v26 = vadd.f32 %v1721_v60, %v1099_v22  ;;  %v1052_v27 = vld [vmem:[#allocation2 + $0x78] sm:$0xff] }
 0x124   : > { %v1215_v28 = vmax.f32 %v1151_v24, 0.0  ;;  %v1120_v30 = vadd.f32 %v1721_v60, %v1052_v27  ;;  %v1068_v31 = vld [vmem:[#allocation2 + $0xf8] sm:$0xff] }
 0x125   : > { %v1263_v32 = vpack.c.bf16 %v1199_v25, %v1199_v25  ;;  %v1231_v35 = vmax.f32 %v1167_v26, 0.0  ;;  %v1136_v36 = vadd.f32 %v1721_v60, %v1068_v31  ;;  %v1084_v37 = vld [vmem:[#allocation2 + $0x178] sm:$0xff] }
 0x126   : > { %v1279_v38 = vpack.c.bf16 %v1215_v28, %v1215_v28  ;;  %v1184_v40 = vmax.f32 %v1120_v30, 0.0  ;;  %v1152_v41 = vadd.f32 %v1721_v60, %v1084_v37  ;;  %v1100_v42 = vld [vmem:[#allocation2 + $0x1f8] sm:$0xff] }
 0x127   : > { %1328 = vst.msk [vmem:[%s1993_s4 + $0x78] sm:$0xf] %vm1297_vm4, %v1263_v32  ;;  %v1295_v29 = vpack.c.bf16 %v1231_v35, %v1231_v35  ;;  %v1200_v44 = vmax.f32 %v1136_v36, 0.0  ;;  %v1168_v46 = vadd.f32 %v1721_v60, %v1100_v42 }
 0x128   : > { %1344 = vst.msk [vmem:[%s1993_s4 + $0xb8] sm:$0xf] %vm1297_vm4, %v1279_v38  ;;  %v1248_v47 = vpack.c.bf16 %v1184_v40, %v1184_v40  ;;  %v1216_v33 = vmax.f32 %v1152_v41, 0.0 }
 0x129   : > { %1360 = vst.msk [vmem:[%s1993_s4 + $0xf8] sm:$0xf] %vm1297_vm4, %v1295_v29  ;;  %v1264_v48 = vpack.c.bf16 %v1200_v44, %v1200_v44  ;;  %v1232_v34 = vmax.f32 %v1168_v46, 0.0 }
 0x12a   : > { %1313 = vst.msk [vmem:[%s1993_s4 + $0x3c] sm:$0xf] %vm1297_vm4, %v1248_v47  ;;  %v1280_v50 = vpack.c.bf16 %v1216_v33, %v1216_v33 }
 0x12b   : > { %1329 = vst.msk [vmem:[%s1993_s4 + $0x7c] sm:$0xf] %vm1297_vm4, %v1264_v48  ;;  %v1296_v51 = vpack.c.bf16 %v1232_v34, %v1232_v34 }
 0x12c   : > { %1345 = vst.msk [vmem:[%s1993_s4 + $0xbc] sm:$0xf] %vm1297_vm4, %v1280_v50 }
 0x12d   : > { %1361 = vst.msk [vmem:[%s1993_s4 + $0xfc] sm:$0xf] %vm1297_vm4, %v1296_v51 }
 0x12e PF: > { %s13_s14 = sadd.s32 1, %s1744_s14   ;;  %s2306_s12 = smov %s1740_s13 }
 0x12f   : > { %p10_p5 = scmp.ge.s32.totalorder %s13_s14, 4   ;;  %s2307_s13 = smov %s2309_s15 }
 0x131   :  { %12 = sbr.rel (!%p10_p5) target bundleno = 2 (0x2), region = 76 }

</bundles_post_ra>
